<compile_context>
chip_gen: v7x
topology: tpu7x:2x2x1
jax: 0.10.0
libtpu: 0.0.40
codegen_flags: <defaults>
</compile_context>

<pallas_src>
import functools

import jax
import jax.numpy as jnp
from jax import lax
from jax.experimental import pallas as pl
from jax.experimental.pallas import tpu as pltpu


def mixvpr_kernel(x_ref, lng_ref, lnb_ref, w1_ref, b1_ref, w2_ref, b2_ref,
                  wr_ref, wct_ref, bias_ref, out_ref, *, mix_depth):
    C = wct_ref.shape[0]
    R = wr_ref.shape[1]
    bt = x_ref.shape[0] // C

    # ---- FeatureMixer stack on all bt*C rows at once:
    #      LN -> Linear -> ReLU -> Linear + residual, depth iterations.
    # fori_loop (not a Python unroll) so x/y/h/z live ranges span one depth.
    x0 = x_ref[...].astype(jnp.float32)                       # (bt*C, HW)

    def mixer_step(d, x):
        g = lng_ref[d]                                         # (1, HW)
        be = lnb_ref[d]                                        # (1, HW)
        # fused LN moments: two independent lane reductions (no mean->var dep)
        mean = jnp.mean(x, axis=-1, keepdims=True)
        msq = jnp.mean(x * x, axis=-1, keepdims=True)
        var = msq - mean * mean
        y = (x - mean) * lax.rsqrt(var + 1e-5) * g + be
        h = jnp.dot(y.astype(jnp.bfloat16), w1_ref[d],
                    preferred_element_type=jnp.float32) + b1_ref[d]
        h = jnp.maximum(h, 0.0)
        z = jnp.dot(h.astype(jnp.bfloat16), w2_ref[d],
                    preferred_element_type=jnp.float32) + b2_ref[d]
        return x + z

    x = lax.fori_loop(0, mix_depth, mixer_step, x0)

    # ---- projections, row-proj first for the whole block (one dense matmul),
    #      then channel-proj on the small per-sample (C, R) slices.
    #      bias[j, o] = bc[o] * colsum(wr)[j] + br[j] was folded in the wrapper.
    x16 = x.astype(jnp.bfloat16)
    p = jnp.dot(x16, wr_ref[...],
                preferred_element_type=jnp.float32)            # (bt*C, R)
    p16 = p.astype(jnp.bfloat16)
    wct = wct_ref[...]                                         # (C, OC) bf16
    bias = bias_ref[...]                                       # (R, OC) f32

    rows = []
    for b in range(bt):
        pb = p16[b * C:(b + 1) * C, :]                         # (C, R)
        # contract over C (dim 0 of both operands): no materialized transpose
        rt = lax.dot_general(pb, wct, (((0,), (0,)), ((), ())),
                             preferred_element_type=jnp.float32) + bias  # (R, OC)
        # per-sample L2 normalization: rsqrt (EUP) + broadcast multiply
        inv = lax.rsqrt(jnp.maximum(jnp.sum(rt * rt), 1e-24))
        rows.append(rt * inv)

    # one full-block, lane-dense, unmasked store
    out_ref[...] = jnp.concatenate(rows, axis=0)               # (bt*R, OC)


def mixvpr_forward(x_nchw, params, *, mix_depth, out_channels, out_rows,
                   batch_tile=None):
    B, C, H, W = x_nchw.shape
    HW = H * W

    # Default to >= 2 grid steps: v7x megacore sharding + DMA/compute overlap.
    if batch_tile is None:
        bt = B // 2 if (B >= 2 and B % 2 == 0) else B
    else:
        bt = min(batch_tile, B)
    assert B % bt == 0, "batch must be divisible by the batch tile"
    # keep the (bt*R, OC) output block sublane-aligned; fall back to one step
    if bt != B and (bt * out_rows) % 8 != 0:
        bt = B
    grid = B // bt

    # glue: NCHW -> (B*C, HW), bf16 to halve the dominant input DMA.
    x = x_nchw.reshape(B * C, HW).astype(jnp.bfloat16)

    # glue / parameter packing: bf16 MXU operands and the folded projection
    # bias  bias[j, o] = bc[o] * sum_hw wr[hw, j] + br[j].
    w1 = params["w1"].astype(jnp.bfloat16)                     # (D, HW, hid)
    w2 = params["w2"].astype(jnp.bfloat16)                     # (D, hid, HW)
    wr = params["wr"].astype(jnp.bfloat16)                     # (HW, R)
    wct = params["wc"].T.astype(jnp.bfloat16)                  # (C, OC)
    s = jnp.sum(params["wr"], axis=0)                          # (R,)
    bias = (s[:, None] * params["bc"][:, 0][None, :]
            + params["br"][0][:, None]).astype(jnp.float32)    # (R, OC)

    # Grid-invariant params: full-array blocks with constant index maps
    # (no re-DMA across steps).
    def full(a):
        return pl.BlockSpec(a.shape, lambda b, _nd=a.ndim: (0,) * _nd)

    out = pl.pallas_call(
        functools.partial(mixvpr_kernel, mix_depth=mix_depth),
        out_shape=jax.ShapeDtypeStruct((B * out_rows, out_channels),
                                       jnp.float32),
        grid_spec=pltpu.PrefetchScalarGridSpec(
            num_scalar_prefetch=0,
            grid=(grid,),
            in_specs=[
                pl.BlockSpec((bt * C, HW), lambda b: (b, 0)),   # folded batch rows
                full(params["lng"]), full(params["lnb"]),
                full(w1), full(params["b1"]),
                full(w2), full(params["b2"]),
                full(wr), full(wct), full(bias),
            ],
            out_specs=pl.BlockSpec((bt * out_rows, out_channels),
                                   lambda b: (b, 0)),           # lane-dense
        ),
        compiler_params=pltpu.CompilerParams(
            dimension_semantics=("parallel",),
            vmem_limit_bytes=48 * 1024 * 1024),
    )(x, params["lng"], params["lnb"], w1, params["b1"], w2, params["b2"],
      wr, wct, bias)

    # glue: (B*R, OC) -> (B, R, OC) -> PyTorch flatten(1) order (B, OC*R).
    out3 = out.reshape(B, out_rows, out_channels)
    return jnp.transpose(out3, (0, 2, 1)).reshape(B, out_channels * out_rows)


def make_params(key, *, in_channels, hw, out_channels, out_rows, mix_depth,
                mlp_ratio):
    hid = int(hw * mlp_ratio)
    keys = jax.random.split(key, 2 * mix_depth + 6)
    w1 = jnp.stack([0.02 * jax.random.normal(keys[2 * d], (hw, hid), jnp.float32)
                    for d in range(mix_depth)])
    w2 = jnp.stack([0.02 * jax.random.normal(keys[2 * d + 1], (hid, hw), jnp.float32)
                    for d in range(mix_depth)])
    # non-trivial LN affine params to exercise that path (PyTorch init is 1/0)
    lng = 1.0 + 0.1 * jax.random.normal(keys[-6], (mix_depth, 1, hw), jnp.float32)
    lnb = 0.1 * jax.random.normal(keys[-5], (mix_depth, 1, hw), jnp.float32)
    # PyTorch default Linear init for the projection heads (+/- 1/sqrt(fan_in)).
    bc_bound = 1.0 / jnp.sqrt(in_channels)
    br_bound = 1.0 / jnp.sqrt(hw)
    wc = jax.random.uniform(keys[-4], (out_channels, in_channels), jnp.float32,
                            -bc_bound, bc_bound)                     # (out, in)
    bc = jax.random.uniform(keys[-3], (out_channels, 1), jnp.float32,
                            -bc_bound, bc_bound)
    wr = jax.random.uniform(keys[-2], (hw, out_rows), jnp.float32,
                            -br_bound, br_bound)
    br = jax.random.uniform(keys[-1], (1, out_rows), jnp.float32,
                            -br_bound, br_bound)
    return {
        "lng": lng,
        "lnb": lnb,
        "w1": w1,
        "b1": jnp.zeros((mix_depth, 1, hid), jnp.float32),
        "w2": w2,
        "b2": jnp.zeros((mix_depth, 1, hw), jnp.float32),
        "wc": wc,
        "bc": bc,
        "wr": wr,
        "br": br,
    }


def ref_forward(x_nchw, params, *, mix_depth):
    B, C, H, W = x_nchw.shape
    x = x_nchw.reshape(B, C, H * W).astype(jnp.float32)
    for d in range(mix_depth):
        g, be = params["lng"][d, 0], params["lnb"][d, 0]
        mean = x.mean(-1, keepdims=True)
        var = ((x - mean) ** 2).mean(-1, keepdims=True)
        y = (x - mean) / jnp.sqrt(var + 1e-5) * g + be
        h = jnp.maximum(y @ params["w1"][d] + params["b1"][d, 0], 0.0)
        x = x + (h @ params["w2"][d] + params["b2"][d, 0])
    xt = jnp.transpose(x, (0, 2, 1))                                  # (B, HW, C)
    cp = xt @ params["wc"].T + params["bc"][:, 0]                     # (B, HW, OC)
    cpt = jnp.transpose(cp, (0, 2, 1))                                # (B, OC, HW)
    r = cpt @ params["wr"] + params["br"][0]                          # (B, OC, R)
    flat = r.reshape(B, -1)
    nrm = jnp.maximum(jnp.linalg.norm(flat, axis=-1, keepdims=True), 1e-12)
    return flat / nrm


if __name__ == "__main__":
    # Small but TPU-friendly shapes consistent with the module's conventions.
    # B=4 so the default batch tile (B//2=2) gives a 2-step "parallel" grid.
    B, in_channels, in_h, in_w = 4, 64, 8, 16          # HW = 128
    out_channels, out_rows = 128, 4
    mix_depth, mlp_ratio = 4, 1
    hw = in_h * in_w

    key = jax.random.PRNGKey(0)
    kx, kp = jax.random.split(key)
    x = jax.random.normal(kx, (B, in_channels, in_h, in_w), jnp.float32)  # NCHW
    params = make_params(kp, in_channels=in_channels, hw=hw,
                         out_channels=out_channels, out_rows=out_rows,
                         mix_depth=mix_depth, mlp_ratio=mlp_ratio)

    out = mixvpr_forward(x, params, mix_depth=mix_depth,
                         out_channels=out_channels, out_rows=out_rows)
    out = jax.block_until_ready(out)

    ref = ref_forward(x, params, mix_depth=mix_depth)
    assert out.shape == (B, out_channels * out_rows)
    # tolerance loosened for bf16 input + bf16 MXU operands (f32 accumulation)
    max_err = float(jnp.max(jnp.abs(out - ref)))
    assert jnp.allclose(out, ref, atol=5e-3, rtol=5e-2), max_err

    print("KERNEL_OK")
</pallas_src>

<mosaic_0001>
module attributes {stable_mosaic.version = 11 : i64} {
  func.func @mixvpr_kernel(%arg0: i32, %arg1: memref<128x128xbf16, #tpu.memory_space<vmem>>, %arg2: memref<4x1x128xf32, #tpu.memory_space<vmem>>, %arg3: memref<4x1x128xf32, #tpu.memory_space<vmem>>, %arg4: memref<4x128x128xbf16, #tpu.memory_space<vmem>>, %arg5: memref<4x1x128xf32, #tpu.memory_space<vmem>>, %arg6: memref<4x128x128xbf16, #tpu.memory_space<vmem>>, %arg7: memref<4x1x128xf32, #tpu.memory_space<vmem>>, %arg8: memref<128x4xbf16, #tpu.memory_space<vmem>>, %arg9: memref<64x128xbf16, #tpu.memory_space<vmem>>, %arg10: memref<4x128xf32, #tpu.memory_space<vmem>>, %arg11: memref<8x128xf32, #tpu.memory_space<vmem>>) attributes {dimension_semantics = [#tpu.dimension_semantics<parallel>], iteration_bounds = array<i64: 2>, scalar_prefetch = 0 : i64, scratch_operands = 0 : i64, tpu.core_type = #tpu.core_type<tc>, window_params = [{transform_indices = @transform_0, window_bounds = array<i64: 128, 128>}, {pipeline_mode = #tpu.pipeline_mode<synchronous>, transform_indices = @transform_1, window_bounds = array<i64: 4, 1, 128>}, {pipeline_mode = #tpu.pipeline_mode<synchronous>, transform_indices = @transform_2, window_bounds = array<i64: 4, 1, 128>}, {pipeline_mode = #tpu.pipeline_mode<synchronous>, transform_indices = @transform_3, window_bounds = array<i64: 4, 128, 128>}, {pipeline_mode = #tpu.pipeline_mode<synchronous>, transform_indices = @transform_4, window_bounds = array<i64: 4, 1, 128>}, {pipeline_mode = #tpu.pipeline_mode<synchronous>, transform_indices = @transform_5, window_bounds = array<i64: 4, 128, 128>}, {pipeline_mode = #tpu.pipeline_mode<synchronous>, transform_indices = @transform_6, window_bounds = array<i64: 4, 1, 128>}, {pipeline_mode = #tpu.pipeline_mode<synchronous>, transform_indices = @transform_7, window_bounds = array<i64: 128, 4>}, {pipeline_mode = #tpu.pipeline_mode<synchronous>, transform_indices = @transform_8, window_bounds = array<i64: 64, 128>}, {pipeline_mode = #tpu.pipeline_mode<synchronous>, transform_indices = @transform_9, window_bounds = array<i64: 4, 128>}, {transform_indices = @transform_10, window_bounds = array<i64: 8, 128>}]} {
    %c0 = arith.constant 0 : index
    %c0_0 = arith.constant 0 : index
    %0 = vector.load %arg1[%c0, %c0_0] : memref<128x128xbf16, #tpu.memory_space<vmem>>, vector<128x128xbf16>
    %1 = arith.extf %0 : vector<128x128xbf16> to vector<128x128xf32>
    %c0_i32 = arith.constant 0 : i32
    %c4_i32 = arith.constant 4 : i32
    %2 = arith.addi %c0_i32, %c4_i32 : i32
    %c1_i32 = arith.constant 1 : i32
    %3 = scf.for %arg12 = %c0_i32 to %2 step %c1_i32 iter_args(%arg13 = %1) -> (vector<128x128xf32>)  : i32 {
      %36 = arith.index_cast %arg12 : i32 to index
      %c0_16 = arith.constant 0 : index
      %c0_17 = arith.constant 0 : index
      %37 = vector.load %arg2[%36, %c0_16, %c0_17] : memref<4x1x128xf32, #tpu.memory_space<vmem>>, vector<1x1x128xf32>
      %38 = vector.shape_cast %37 : vector<1x1x128xf32> to vector<1x128xf32>
      %39 = arith.index_cast %arg12 : i32 to index
      %c0_18 = arith.constant 0 : index
      %c0_19 = arith.constant 0 : index
      %40 = vector.load %arg3[%39, %c0_18, %c0_19] : memref<4x1x128xf32, #tpu.memory_space<vmem>>, vector<1x1x128xf32>
      %41 = vector.shape_cast %40 : vector<1x1x128xf32> to vector<1x128xf32>
      %cst_20 = arith.constant dense<0.000000e+00> : vector<128xf32>
      %42 = vector.multi_reduction <add>, %arg13, %cst_20 [1] : vector<128x128xf32> to vector<128xf32>
      %43 = vector.shape_cast %42 : vector<128xf32> to vector<128x1xf32>
      %cst_21 = arith.constant 1.280000e+02 : f32
      %44 = vector.broadcast %cst_21 : f32 to vector<128x1xf32>
      %45 = arith.divf %43, %44 : vector<128x1xf32>
      %46 = arith.mulf %arg13, %arg13 : vector<128x128xf32>
      %cst_22 = arith.constant dense<0.000000e+00> : vector<128xf32>
      %47 = vector.multi_reduction <add>, %46, %cst_22 [1] : vector<128x128xf32> to vector<128xf32>
      %48 = vector.shape_cast %47 : vector<128xf32> to vector<128x1xf32>
      %cst_23 = arith.constant 1.280000e+02 : f32
      %49 = vector.broadcast %cst_23 : f32 to vector<128x1xf32>
      %50 = arith.divf %48, %49 : vector<128x1xf32>
      %51 = arith.mulf %45, %45 : vector<128x1xf32>
      %52 = arith.subf %50, %51 : vector<128x1xf32>
      %53 = vector.broadcast %45 : vector<128x1xf32> to vector<128x128xf32>
      %54 = arith.subf %arg13, %53 : vector<128x128xf32>
      %cst_24 = arith.constant 9.99999974E-6 : f32
      %55 = vector.broadcast %cst_24 : f32 to vector<128x1xf32>
      %56 = arith.addf %52, %55 : vector<128x1xf32>
      %57 = math.rsqrt %56 : vector<128x1xf32>
      %58 = vector.broadcast %57 : vector<128x1xf32> to vector<128x128xf32>
      %59 = arith.mulf %54, %58 : vector<128x128xf32>
      %60 = vector.broadcast %38 : vector<1x128xf32> to vector<128x128xf32>
      %61 = arith.mulf %59, %60 : vector<128x128xf32>
      %62 = vector.broadcast %41 : vector<1x128xf32> to vector<128x128xf32>
      %63 = arith.addf %61, %62 : vector<128x128xf32>
      %64 = arith.truncf %63 : vector<128x128xf32> to vector<128x128xbf16>
      %65 = arith.index_cast %arg12 : i32 to index
      %c0_25 = arith.constant 0 : index
      %c0_26 = arith.constant 0 : index
      %66 = vector.load %arg4[%65, %c0_25, %c0_26] : memref<4x128x128xbf16, #tpu.memory_space<vmem>>, vector<1x128x128xbf16>
      %67 = vector.shape_cast %66 : vector<1x128x128xbf16> to vector<128x128xbf16>
      %cst_27 = arith.constant dense<0.000000e+00> : vector<128x128xf32>
      %68 = tpu.matmul %64, %67, %cst_27 {dimension_numbers = #tpu.dot_dimension_numbers<[1], [0], [0], [1], [0, 0, 1, 1], [], []>} : vector<128x128xbf16>, vector<128x128xbf16>, vector<128x128xf32> -> vector<128x128xf32>
      %69 = arith.index_cast %arg12 : i32 to index
      %c0_28 = arith.constant 0 : index
      %c0_29 = arith.constant 0 : index
      %70 = vector.load %arg5[%69, %c0_28, %c0_29] : memref<4x1x128xf32, #tpu.memory_space<vmem>>, vector<1x1x128xf32>
      %71 = vector.shape_cast %70 : vector<1x1x128xf32> to vector<1x128xf32>
      %72 = vector.broadcast %71 : vector<1x128xf32> to vector<128x128xf32>
      %73 = arith.addf %68, %72 : vector<128x128xf32>
      %cst_30 = arith.constant 0.000000e+00 : f32
      %74 = vector.broadcast %cst_30 : f32 to vector<128x128xf32>
      %75 = arith.maximumf %73, %74 : vector<128x128xf32>
      %76 = arith.truncf %75 : vector<128x128xf32> to vector<128x128xbf16>
      %77 = arith.index_cast %arg12 : i32 to index
      %c0_31 = arith.constant 0 : index
      %c0_32 = arith.constant 0 : index
      %78 = vector.load %arg6[%77, %c0_31, %c0_32] : memref<4x128x128xbf16, #tpu.memory_space<vmem>>, vector<1x128x128xbf16>
      %79 = vector.shape_cast %78 : vector<1x128x128xbf16> to vector<128x128xbf16>
      %cst_33 = arith.constant dense<0.000000e+00> : vector<128x128xf32>
      %80 = tpu.matmul %76, %79, %cst_33 {dimension_numbers = #tpu.dot_dimension_numbers<[1], [0], [0], [1], [0, 0, 1, 1], [], []>} : vector<128x128xbf16>, vector<128x128xbf16>, vector<128x128xf32> -> vector<128x128xf32>
      %81 = arith.index_cast %arg12 : i32 to index
      %c0_34 = arith.constant 0 : index
      %c0_35 = arith.constant 0 : index
      %82 = vector.load %arg7[%81, %c0_34, %c0_35] : memref<4x1x128xf32, #tpu.memory_space<vmem>>, vector<1x1x128xf32>
      %83 = vector.shape_cast %82 : vector<1x1x128xf32> to vector<1x128xf32>
      %84 = vector.broadcast %83 : vector<1x128xf32> to vector<128x128xf32>
      %85 = arith.addf %80, %84 : vector<128x128xf32>
      %86 = arith.addf %arg13, %85 : vector<128x128xf32>
      scf.yield %86 : vector<128x128xf32>
    }
    %c4_i32_1 = arith.constant 4 : i32
    %4 = arith.truncf %3 : vector<128x128xf32> to vector<128x128xbf16>
    %c0_2 = arith.constant 0 : index
    %c0_3 = arith.constant 0 : index
    %5 = vector.load %arg8[%c0_2, %c0_3] : memref<128x4xbf16, #tpu.memory_space<vmem>>, vector<128x4xbf16>
    %cst = arith.constant dense<0.000000e+00> : vector<128x4xf32>
    %6 = tpu.matmul %4, %5, %cst {dimension_numbers = #tpu.dot_dimension_numbers<[1], [0], [0], [1], [0, 0, 1, 1], [], []>} : vector<128x128xbf16>, vector<128x4xbf16>, vector<128x4xf32> -> vector<128x4xf32>
    %7 = arith.truncf %6 : vector<128x4xf32> to vector<128x4xbf16>
    %c0_4 = arith.constant 0 : index
    %c0_5 = arith.constant 0 : index
    %8 = vector.load %arg9[%c0_4, %c0_5] : memref<64x128xbf16, #tpu.memory_space<vmem>>, vector<64x128xbf16>
    %c0_6 = arith.constant 0 : index
    %c0_7 = arith.constant 0 : index
    %9 = vector.load %arg10[%c0_6, %c0_7] : memref<4x128xf32, #tpu.memory_space<vmem>>, vector<4x128xf32>
    %10 = vector.extract_strided_slice %7 {offsets = [0, 0], sizes = [64, 4], strides = [1, 1]} : vector<128x4xbf16> to vector<64x4xbf16>
    %cst_8 = arith.constant dense<0.000000e+00> : vector<4x128xf32>
    %11 = tpu.matmul %10, %8, %cst_8 {dimension_numbers = #tpu.dot_dimension_numbers<[0], [0], [1], [1], [0, 1, 1, 1], [], []>} : vector<64x4xbf16>, vector<64x128xbf16>, vector<4x128xf32> -> vector<4x128xf32>
    %12 = arith.addf %11, %9 : vector<4x128xf32>
    %13 = arith.mulf %12, %12 : vector<4x128xf32>
    %14 = vector.shape_cast %13 : vector<4x128xf32> to vector<1x4x128xf32>
    %cst_9 = arith.constant dense<0.000000e+00> : vector<1xf32>
    %15 = vector.multi_reduction <add>, %14, %cst_9 [1, 2] : vector<1x4x128xf32> to vector<1xf32>
    %16 = vector.shape_cast %15 : vector<1xf32> to vector<1x1x1xf32>
    %17 = vector.extract %16[0, 0, 0] : f32 from vector<1x1x1xf32>
    %cst_10 = arith.constant 1.000000e-24 : f32
    %18 = arith.maximumf %17, %cst_10 : f32
    %19 = math.rsqrt %18 : f32
    %20 = vector.broadcast %19 : f32 to vector<4x128xf32>
    %21 = arith.mulf %12, %20 : vector<4x128xf32>
    %22 = vector.extract_strided_slice %7 {offsets = [64, 0], sizes = [64, 4], strides = [1, 1]} : vector<128x4xbf16> to vector<64x4xbf16>
    %cst_11 = arith.constant dense<0.000000e+00> : vector<4x128xf32>
    %23 = tpu.matmul %22, %8, %cst_11 {dimension_numbers = #tpu.dot_dimension_numbers<[0], [0], [1], [1], [0, 1, 1, 1], [], []>} : vector<64x4xbf16>, vector<64x128xbf16>, vector<4x128xf32> -> vector<4x128xf32>
    %24 = arith.addf %23, %9 : vector<4x128xf32>
    %25 = arith.mulf %24, %24 : vector<4x128xf32>
    %26 = vector.shape_cast %25 : vector<4x128xf32> to vector<1x4x128xf32>
    %cst_12 = arith.constant dense<0.000000e+00> : vector<1xf32>
    %27 = vector.multi_reduction <add>, %26, %cst_12 [1, 2] : vector<1x4x128xf32> to vector<1xf32>
    %28 = vector.shape_cast %27 : vector<1xf32> to vector<1x1x1xf32>
    %29 = vector.extract %28[0, 0, 0] : f32 from vector<1x1x1xf32>
    %cst_13 = arith.constant 1.000000e-24 : f32
    %30 = arith.maximumf %29, %cst_13 : f32
    %31 = math.rsqrt %30 : f32
    %32 = vector.broadcast %31 : f32 to vector<4x128xf32>
    %33 = arith.mulf %24, %32 : vector<4x128xf32>
    %34 = tpu.concatenate %21, %33 in 0 : vector<4x128xf32>, vector<4x128xf32> -> vector<8x128xf32>
    %c0_14 = arith.constant 0 : index
    %c0_15 = arith.constant 0 : index
    %35 = vector.load %arg11[%c0_14, %c0_15] : memref<8x128xf32, #tpu.memory_space<vmem>>, vector<8x128xf32>
    tpu.vector_store %arg11[%c0_14, %c0_15], %34 {strides = array<i32>} : memref<8x128xf32, #tpu.memory_space<vmem>>, vector<8x128xf32>,
    return
  }
  func.func @transform_0(%arg0: i32) -> (i32, i32) {
    %c0_i32 = arith.constant 0 : i32
    %c0_i32_0 = arith.constant 0 : i32
    return %arg0, %c0_i32 : i32, i32
  }
  func.func @transform_1(%arg0: i32) -> (i32, i32, i32) {
    %c0_i32 = arith.constant 0 : i32
    %c0_i32_0 = arith.constant 0 : i32
    %c0_i32_1 = arith.constant 0 : i32
    %c0_i32_2 = arith.constant 0 : i32
    return %c0_i32, %c0_i32_0, %c0_i32_1 : i32, i32, i32
  }
  func.func @transform_2(%arg0: i32) -> (i32, i32, i32) {
    %c0_i32 = arith.constant 0 : i32
    %c0_i32_0 = arith.constant 0 : i32
    %c0_i32_1 = arith.constant 0 : i32
    %c0_i32_2 = arith.constant 0 : i32
    return %c0_i32, %c0_i32_0, %c0_i32_1 : i32, i32, i32
  }
  func.func @transform_3(%arg0: i32) -> (i32, i32, i32) {
    %c0_i32 = arith.constant 0 : i32
    %c0_i32_0 = arith.constant 0 : i32
    %c0_i32_1 = arith.constant 0 : i32
    %c0_i32_2 = arith.constant 0 : i32
    return %c0_i32, %c0_i32_0, %c0_i32_1 : i32, i32, i32
  }
  func.func @transform_4(%arg0: i32) -> (i32, i32, i32) {
    %c0_i32 = arith.constant 0 : i32
    %c0_i32_0 = arith.constant 0 : i32
    %c0_i32_1 = arith.constant 0 : i32
    %c0_i32_2 = arith.constant 0 : i32
    return %c0_i32, %c0_i32_0, %c0_i32_1 : i32, i32, i32
  }
  func.func @transform_5(%arg0: i32) -> (i32, i32, i32) {
    %c0_i32 = arith.constant 0 : i32
    %c0_i32_0 = arith.constant 0 : i32
    %c0_i32_1 = arith.constant 0 : i32
    %c0_i32_2 = arith.constant 0 : i32
    return %c0_i32, %c0_i32_0, %c0_i32_1 : i32, i32, i32
  }
  func.func @transform_6(%arg0: i32) -> (i32, i32, i32) {
    %c0_i32 = arith.constant 0 : i32
    %c0_i32_0 = arith.constant 0 : i32
    %c0_i32_1 = arith.constant 0 : i32
    %c0_i32_2 = arith.constant 0 : i32
    return %c0_i32, %c0_i32_0, %c0_i32_1 : i32, i32, i32
  }
  func.func @transform_7(%arg0: i32) -> (i32, i32) {
    %c0_i32 = arith.constant 0 : i32
    %c0_i32_0 = arith.constant 0 : i32
    %c0_i32_1 = arith.constant 0 : i32
    return %c0_i32, %c0_i32_0 : i32, i32
  }
  func.func @transform_8(%arg0: i32) -> (i32, i32) {
    %c0_i32 = arith.constant 0 : i32
    %c0_i32_0 = arith.constant 0 : i32
    %c0_i32_1 = arith.constant 0 : i32
    return %c0_i32, %c0_i32_0 : i32, i32
  }
  func.func @transform_9(%arg0: i32) -> (i32, i32) {
    %c0_i32 = arith.constant 0 : i32
    %c0_i32_0 = arith.constant 0 : i32
    %c0_i32_1 = arith.constant 0 : i32
    return %c0_i32, %c0_i32_0 : i32, i32
  }
  func.func @transform_10(%arg0: i32) -> (i32, i32) {
    %c0_i32 = arith.constant 0 : i32
    %c0_i32_0 = arith.constant 0 : i32
    return %arg0, %c0_i32 : i32, i32
  }
}

</mosaic_0001>

<bundles_post_ra>
// kernel: tpu_custom_call.1
= control target key start
LH: loop header
LB: loop body
LE: loop exit
PB: predicated region body
PF: predicated region fallthrough
CT: control target
= control target key end

     0   :  { %15 = vsyncpa [#allocation3], 0  ;;  %s3238_s0 = inlined_call_operand.hbm [shape: bf16[256,128], index: 0, kind: input, shape index: {}]   ;;  %s3239_s1 = inlined_call_operand.vmem [shape: f32[4,1,128], index: 1, kind: input, shape index: {}]   ;;  %s3240_s2 = inlined_call_operand.vmem [shape: f32[4,1,128], index: 2, kind: input, shape index: {}]   ;;  %s3241_s3 = inlined_call_operand.hbm [shape: bf16[4,128,128], index: 3, kind: input, shape index: {}]   ;;  %s3242_s4 = inlined_call_operand.vmem [shape: f32[4,1,128], index: 4, kind: input, shape index: {}]   ;;  %s3243_s5 = inlined_call_operand.hbm [shape: bf16[4,128,128], index: 5, kind: input, shape index: {}]   ;;  %s3244_s6 = inlined_call_operand.vmem [shape: f32[4,1,128], index: 6, kind: input, shape index: {}]   ;;  %s3245_s7 = inlined_call_operand.vmem [shape: bf16[128,4], index: 7, kind: input, shape index: {}]   ;;  %s3246_s8 = inlined_call_operand.vmem [shape: bf16[64,128], index: 8, kind: input, shape index: {}]   ;;  %s3247_s9 = inlined_call_operand.vmem [shape: f32[4,128], index: 9, kind: input, shape index: {}]   ;;  %s3248_s10 = inlined_call_operand.hbm [shape: f32[16,128], index: 10, kind: output, shape index: {}]  }
   0x1   :  { %17 = vsyncpa [#allocation3 + $0x1], 0 }
   0x2   :  { %18 = vsyncpa [#allocation6], 0 }
   0x3   :  { %19 = vsyncpa [#allocation4], 0 }
   0x4   :  { %21 = vsyncpa [#allocation4 + $0x1], 0  ;;  %s2557_s13 = smov 0   ;;  %s2559_s14 = smov 0  }
   0x5   :  { %s2561_s15 = smov 0   ;;  %s2563_s16 = smov 0  }
   0x6 LB: > { %3256 = sst [smem:[#allocation12_spill]] %s2411_s13  ;;  %s2578_s17 = sadd.s32 4294967295, %s2423_s16   ;;  %s2423_s16 = sphi %s2563_s16, %s3307_s16   ;;  %s2419_s15 = sphi %s2561_s15, %s3306_s15   ;;  %s2415_s14 = sphi %s2559_s14, %s3305_s14   ;;  %s2411_s13 = sphi %s2557_s13, %s3304_s13  }
   0x7   : > { %s1644_s18 = sadd.s32 4294967294, %s2423_s16   ;;  %p47_p0 = scmp.ne.s32.totalorder %s2415_s14, %s2411_s13 }
   0x8   : > { %p3249_p1 = scmp.eq.s32.totalorder %s2578_s17, 0  ;;  %p266_p3 = scmp.eq.s32.totalorder %s1644_s18, 1 }
   0x9   : > { %p1645_p5 = scmp.ge.s32.totalorder %s2423_s16, 1  ;;  %p273_p7 = scmp.lt.s32.totalorder %s2423_s16, 3 }
   0xa   : > { %p2587_p4 = por %p3249_p1, %p47_p0  ;;  %p2592_p6 = por %p266_p3, %p47_p0 }
   0xb   : > { %p2597_p8 = pnand %p1645_p5, %p273_p7  ;;  %s2493_s22 = smov [#allocation5]  }
   0xc   : > { %s3257_s19 = scalar_select %p2587_p4, 1, 0 }
   0xd   : > { %s3258_s20 = scalar_select %p2592_p6, 1, 0 }
   0xe   : > { %s291_s23 = sshll.u32 %s2493_s22, 4  ;;  %p1938_p9 = pneg %p2597_p8  ;;  %s2601_s23 = int_to_ptr.vmem [resolvable:$true] %s291_s23 }
   0xf   : > { %3259 = sst [smem:[#allocation13_spill]] %s3258_s20  ;;  %s2494_s25 = smov [#allocation7]  }
  0x10   : > { %p2608_p11 = pnand %p1938_p9, %p3249_p1  ;;  %s307_s26 = sshll.u32 %s2494_s25, 4  ;;  %s2612_s26 = int_to_ptr.vmem [resolvable:$true] %s307_s26 }
  0x11   : > { %s2199_s29 = scalar_lea.hbm %s3241_s3, 4096 }
  0x12   : > { %p2200_p12 = scmp.ne.s32.totalorder %s3241_s3, %s2199_s29  ;;  %p2201_p13 = pneg %p2608_p11 }
  0x13   : > { %p2206_p5 = scmp.lt.u32.totalorder %s2199_s29, %s3241_s3 }
  0x14   : > { %p2202_p0 = pnand %p2201_p13, %p2200_p12 }
  0x16   : > { %p2203_p3 = pneg %p2202_p0 }
  0x18   : > { %p2208_p7 = pnand %p2206_p5, %p2203_p3 }
  0x1a   : > { %2211 = shalt.err (!%p2208_p7)
}
  0x1b   : > { %s2212_s22 = scalar_lea.vmem %s2601_s23, 4096  ;;  %p2220_p2 = scmp.lt.s32.totalorder %s2601_s23, %s2601_s23 }
  0x1c   : > { %p2213_p9 = scmp.ne.s32.totalorder %s2601_s23, %s2212_s22  ;;  %p2221_p12 = scmp.lt.s32.totalorder %s2212_s22, %s2212_s22 }
  0x1e   : > { %p2215_p10 = pnand %p2213_p9, %p2201_p13  ;;  %p2222_p0 = por %p2221_p12, %p2220_p2 }
  0x20   : > { %p2216_p1 = pneg %p2215_p10 }
  0x22   : > { %p2223_p6 = pnand %p2222_p0, %p2216_p1 }
  0x24   : > { %2226 = shalt.err (!%p2223_p6)
}
  0x25   : > { %s3252_s25 = smov 64   ;;  %s3253_s27 = smov 4  }
  0x26   : > { %1941 = dma.hbm_to_vmem [thread:$0]  (!%p2608_p11), %s3241_s3, 4096, %s2601_s23, [#allocation6], %s3252_s25, %s3252_s25, %s3253_s27  }
  0x27   : > { %s2227_s12 = scalar_lea.hbm %s3243_s5, 4096 }
  0x28   : > { %p2228_p1 = scmp.ne.s32.totalorder %s3243_s5, %s2227_s12  ;;  %p2234_p10 = scmp.lt.u32.totalorder %s2227_s12, %s3243_s5 }
  0x2a   : > { %p2230_p2 = pnand %p2228_p1, %p2201_p13 }
  0x2c   : > { %p2231_p6 = pneg %p2230_p2 }
  0x2e   : > { %p2236_p3 = pnand %p2234_p10, %p2231_p6 }
  0x30   : > { %2239 = shalt.err (!%p2236_p3)
}
  0x31   : > { %s2240_s23 = scalar_lea.vmem %s2612_s26, 4096  ;;  %p2248_p12 = scmp.lt.s32.totalorder %s2612_s26, %s2612_s26 }
  0x32   : > { %p2241_p5 = scmp.ne.s32.totalorder %s2612_s26, %s2240_s23  ;;  %p2249_p0 = scmp.lt.s32.totalorder %s2240_s23, %s2240_s23 }
  0x34   : > { %p2243_p7 = pnand %p2241_p5, %p2201_p13  ;;  %p2250_p1 = por %p2249_p0, %p2248_p12 }
  0x36   : > { %p2244_p9 = pneg %p2243_p7 }
  0x38   : > { %p2251_p2 = pnand %p2250_p1, %p2244_p9 }
  0x3a   : > { %2254 = shalt.err (!%p2251_p2)
}
  0x3b   : > { %1944 = dma.hbm_to_vmem [thread:$0]  (!%p2608_p11), %s3243_s5, 4096, %s2612_s26, [#allocation6], %s3252_s25, %s3252_s25, %s3253_s27  }
  0x3c   : > { %s2673_s24 = sadd.s32 1, %s2423_s16   ;;  %s34_s28 = sadd.s32 1, %s2419_s15 }
  0x3d   : > { %s31_s29 = ssub.s32 %s2423_s16, %s2673_s24  ;;  %p41_p13 = scmp.ne.s32.totalorder %s2419_s15, %s2415_s14 }
  0x3e   : > { %p32_p6 = scmp.eq.s32.totalorder %s31_s29, 0  ;;  %p42_p10 = scmp.eq.s32.totalorder %s2423_s16, 0 }
  0x3f   : > { %p3262_p3 = scmp.eq.s32.totalorder %s2578_s17, 1  ;;  %p1955_p7 = scmp.lt.s32.totalorder %s2423_s16, 2 }
  0x40   : > { %s2689_s11 = scalar_select %p32_p6, %s2419_s15, %s34_s28  }
  0x41   : > { %p2683_p5 = por %p3262_p3, %p41_p13  ;;  %p43_p9 = por %p42_p10, %p41_p13 }
  0x42   : > { %s333_s12 = sand.u32 1, %s2419_s15   ;;  %s1698_s26 = sshll.u32 %s2423_s16, 10 }
  0x43   : > { %s3263_s30 = scalar_select %p2683_p5, 1, 0 }
  0x44   : > { %s1649_s18 = sshll.u32 %s333_s12, 6  ;;  %s2696_s13 = scalar_lea.hbm %s3238_s0, %s1698_s26 }
  0x45   : > { %s337_s20 = scalar_lea.vmem [#allocation2], %s1649_s18  ;;  %p2700_p11 = pnand %p1955_p7, %p43_p9 }
  0x46   : > { %s344_s29 = sshll.u32 %s337_s20, 4  ;;  %s2704_s25 = scalar_lea.sflag [#allocation3], %s333_s12  ;;  %s2698_s29 = int_to_ptr.vmem [resolvable:$true] %s344_s29 }
  0x47   : > { %s2255_s27 = scalar_lea.hbm %s2696_s13, 1024  ;;  %p2257_p0 = pneg %p2700_p11 }
  0x48   : > { %p2256_p12 = scmp.ne.s32.totalorder %s2696_s13, %s2255_s27  ;;  %s2260_s22 = scalar_lea.hbm %s3238_s0, 2048 }
  0x49   : > { %p2261_p13 = scmp.lt.u32.totalorder %s2696_s13, %s3238_s0  ;;  %p2262_p6 = scmp.lt.u32.totalorder %s2260_s22, %s2255_s27 }
  0x4a   : > { %p2258_p1 = pnand %p2257_p0, %p2256_p12  ;;  %p2264_p3 = scmp.lt.u32.totalorder %s2255_s27, %s2696_s13 }
  0x4b   : > { %p2263_p10 = por %p2262_p6, %p2261_p13 }
  0x4c   : > { %p2259_p2 = pneg %p2258_p1 }
  0x4d   : > { %p2265_p7 = por %p2264_p3, %p2263_p10 }
  0x4f   : > { %p2266_p9 = pnand %p2265_p7, %p2259_p2 }
  0x51   : > { %2269 = shalt.err (!%p2266_p9)
}
  0x52   : > { %s2270_s12 = scalar_lea.vmem %s2698_s29, 1024  ;;  %s2497_s18 = smov [#allocation2]  }
  0x53   : > { %p2271_p12 = scmp.ne.s32.totalorder %s2698_s29, %s2270_s12  ;;  %s2275_s26 = sshll.u32 %s2497_s18, 4  ;;  %s2276_s26 = int_to_ptr.vmem [resolvable:$false] %s2275_s26 }
  0x54   : > { %s2277_s23 = scalar_lea.vmem %s2276_s26, 2048  ;;  %p2278_p4 = scmp.lt.s32.totalorder %s2698_s29, %s2276_s26 }
  0x55   : > { %p2273_p1 = pnand %p2271_p12, %p2257_p0  ;;  %p2279_p13 = scmp.lt.s32.totalorder %s2277_s23, %s2270_s12 }
  0x57   : > { %p2274_p5 = pneg %p2273_p1  ;;  %p2280_p6 = por %p2279_p13, %p2278_p4 }
  0x59   : > { %p2281_p10 = pnand %p2280_p6, %p2274_p5 }
  0x5b   : > { %2284 = shalt.err (!%p2281_p10)
}
  0x5c   : > { %s3265_s27 = smov 4   ;;  %s3266_s22 = smov 64  }
  0x5d   : > { %1948 = dma.hbm_to_vmem [thread:$0]  (!%p2700_p11), %s2696_s13, 1024, %s2698_s29, %s2704_s25, %s3266_s22, %s3266_s22, %s3265_s27  }
  0x5e   : > { %356 = sbr.rel (%p2597_p8) target bundleno = 1679 (0x68f), region = 60  ;;  %s2738_s20 = sand.u32 (!%p2597_p8), 1, %s2415_s14  }
  0x5f   : > { %s1653_s12 = sshll.u32 (!%p2597_p8), %s2738_s20, 6  ;;  %s359_s18 = scalar_lea.sflag (!%p2597_p8), [#allocation3], %s2738_s20 }
  0x60   : > { %s362_s26 = scalar_lea.vmem (!%p2597_p8), [#allocation2], %s1653_s12  ;;  %p3267_p4 = scmp.ne.s32.totalorder (!%p2597_p8), %s3257_s19, 0 }
  0x65   : > { %2398 = dma.done.wait (%p3267_p4), %s359_s18, 1024  }
  0x66   : > { %2400 = vsyncadd (%p3267_p4), %s359_s18, 4294966272  ;;  %p3268_p5 = scmp.eq.s32.totalorder %s2578_s17, 0 }
  0x68   : > { %2402 = dma.done.wait (%p3268_p5), [#allocation6], 8192   ;;  %p3269_p11 = pmov %p3268_p5 }
  0x69   : > { %s1656_s21 = sshll.u32 %s2738_s20, 3  ;;  %v1702_v0 = vld [vmem:[%s362_s26] sm:$0xff]   ;;  %v1733_v1 = vld [vmem:[%s362_s26 + $0x8] sm:$0xff]   ;;  %v1734_v2 = vld [vmem:[%s362_s26 + $0x10] sm:$0xff]   ;;  %s2785_s25 = smov 0  }
  0x6a   : > { %2404 = vsyncadd (%p3269_p11), [#allocation6], 4294959104  ;;  %v1703_v3 = vunpack.c.l.bf16 %v1702_v0   ;;  %v1704_v4 = vunpack.c.h.bf16 %v1702_v0   ;;  %v1707_v5 = vunpack.c.l.bf16 %v1733_v1   ;;  %v1708_v6 = vunpack.c.h.bf16 %v1733_v1   ;;  %v1735_v7 = vld [vmem:[%s362_s26 + $0x18] sm:$0xff]   ;;  %v1736_v8 = vld [vmem:[%s362_s26 + $0x20] sm:$0xff]   ;;  %s2751_s19 = scalar_lea.vmem [#allocation8], %s1656_s21 }
  0x6b   : > { %v1737_v9 = vld [vmem:[%s362_s26 + $0x28] sm:$0xff]   ;;  %v1711_v10 = vunpack.c.l.bf16 %v1734_v2   ;;  %v1712_v11 = vunpack.c.h.bf16 %v1734_v2   ;;  %v1715_v12 = vunpack.c.l.bf16 %v1735_v7   ;;  %v1716_v13 = vunpack.c.h.bf16 %v1735_v7   ;;  %v1738_v14 = vld [vmem:[%s362_s26 + $0x30] sm:$0xff]   ;;  %v1739_v15 = vld [vmem:[%s362_s26 + $0x38] sm:$0xff]  }
  0x6c   : > { %v1719_v16 = vunpack.c.l.bf16 %v1736_v8   ;;  %v1720_v17 = vunpack.c.h.bf16 %v1736_v8   ;;  %v1723_v18 = vunpack.c.l.bf16 %v1737_v9   ;;  %v1724_v19 = vunpack.c.h.bf16 %v1737_v9  }
  0x6d   : > { %v1727_v20 = vunpack.c.l.bf16 %v1738_v14   ;;  %v1728_v21 = vunpack.c.h.bf16 %v1738_v14   ;;  %v1731_v22 = vunpack.c.l.bf16 %v1739_v15   ;;  %v1732_v23 = vunpack.c.h.bf16 %v1739_v15  }
  0x6e LB: >> { %467 = vadd.xlane.f32.xlu0 %v2487_v3  ;;  %471 = vadd.xlane.f32.xlu1 %v2479_v5  ;;  %v516_v24 = vmul.f32 %v2487_v3, %v2487_v3  ;;  %v517_v25 = vmul.f32 %v2483_v4, %v2483_v4  ;;  %v518_v26 = vmul.f32 %v2479_v5, %v2479_v5  ;;  %s1699_s13 = sshll.u32 %s2491_s25, 6  ;;  %s463_s22 = scalar_lea.vmem %s3239_s1, %s2491_s25  ;;  %s2491_s25 = sphi %s2785_s25, %s446_s25   ;;  %v2487_v3 = vphi %v1703_v3, %v3298_v3   ;;  %v2483_v4 = vphi %v1704_v4, %v3297_v4   ;;  %v2479_v5 = vphi %v1707_v5, %v3296_v5   ;;  %v2475_v6 = vphi %v1708_v6, %v3295_v6   ;;  %v2471_v10 = vphi %v1711_v10, %v3294_v10   ;;  %v2467_v11 = vphi %v1712_v11, %v3293_v11   ;;  %v2463_v12 = vphi %v1715_v12, %v3292_v12   ;;  %v2459_v13 = vphi %v1716_v13, %v3291_v13   ;;  %v2455_v16 = vphi %v1719_v16, %v3290_v16   ;;  %v2451_v17 = vphi %v1720_v17, %v3289_v17   ;;  %v2447_v18 = vphi %v1723_v18, %v3288_v18   ;;  %v2443_v19 = vphi %v1724_v19, %v3287_v19   ;;  %v2439_v20 = vphi %v1727_v20, %v3286_v20   ;;  %v2435_v21 = vphi %v1728_v21, %v3285_v21   ;;  %v2431_v22 = vphi %v1731_v22, %v3284_v22   ;;  %v2427_v23 = vphi %v1732_v23, %v3283_v23  }
  0x6f   : >> { %v519_v27 = vmul.f32 %v2475_v6, %v2475_v6  ;;  %s2855_s29 = scalar_lea.vmem [#allocation5], %s1699_s13  ;;  %v520_v29 = vmul.f32 %v2471_v10, %v2471_v10  ;;  %v521_v30 = vmul.f32 %v2467_v11, %v2467_v11  ;;  %v522_v32 = vmul.f32 %v2463_v12, %v2463_v12  ;;  %s2901_s28 = scalar_lea.vmem [#allocation7], %s1699_s13 }
  0x70   : >> { %v2135_v28 = vld [vmem:[%s2855_s29] sm:$0xff]   ;;  %v2136_v31 = vld [vmem:[%s2855_s29 + $0x8] sm:$0xff]   ;;  %v523_v33 = vmul.f32 %v2459_v13, %v2459_v13  ;;  %v2137_v34 = vld [vmem:[%s2855_s29 + $0x10] sm:$0xff]   ;;  %v524_v37 = vmul.f32 %v2455_v16, %v2455_v16  ;;  %v525_v38 = vmul.f32 %v2451_v17, %v2451_v17  ;;  %v526_v40 = vmul.f32 %v2447_v18, %v2447_v18  ;;  %s465_s26 = scalar_lea.vmem %s3240_s2, %s2491_s25  ;;  %s942_s27 = scalar_lea.vmem %s3244_s6, %s2491_s25 }
  0x71   : >> { %1798 = vmatprep.subr.bf16.mxu0 %v2135_v28  ;;  %v2138_v35 = vld [vmem:[%s2855_s29 + $0x18] sm:$0xff]   ;;  %v2139_v36 = vld [vmem:[%s2855_s29 + $0x20] sm:$0xff]   ;;  %v2140_v39 = vld [vmem:[%s2855_s29 + $0x28] sm:$0xff]   ;;  %v527_v41 = vmul.f32 %v2443_v19, %v2443_v19  ;;  %v528_v44 = vmul.f32 %v2439_v20, %v2439_v20  ;;  %v529_v45 = vmul.f32 %v2435_v21, %v2435_v21  ;;  %v530_v46 = vmul.f32 %v2431_v22, %v2431_v22 }
  0x72   : >> { %469 = vadd.xlane.f32.xlu0 %v2483_v4  ;;  %473 = vadd.xlane.f32.xlu1 %v2475_v6  ;;  %v2141_v42 = vld [vmem:[%s2855_s29 + $0x30] sm:$0xff]   ;;  %v2142_v43 = vld [vmem:[%s2855_s29 + $0x38] sm:$0xff]   ;;  %v531_v47 = vmul.f32 %v2427_v23, %v2427_v23  ;;  %v2143_v48 = vld [vmem:[%s2901_s28] sm:$0xff]   ;;  %s747_s29 = scalar_lea.vmem %s3242_s4, %s2491_s25  ;;  %s446_s25 = sadd.s32 1, %s2491_s25  }
  0x73   : >> { %1799 = vmatpush3.bf16.msra.mxu0 %v2135_v28  ;;  %v2144_v49 = vld [vmem:[%s2901_s28 + $0x8] sm:$0xff]   ;;  %1830 = vmatprep.subr.bf16.mxu1 %v2143_v48  ;;  %v2145_v50 = vld [vmem:[%s2901_s28 + $0x10] sm:$0xff]   ;;  %v2146_v51 = vld [vmem:[%s2901_s28 + $0x18] sm:$0xff]   ;;  %p3080_p8 = scmp.ge.s32.totalorder %s446_s25, 4  }
  0x74   : >> { %1800 = vmatprep.subr.bf16.mxu0 %v2136_v31  ;;  %1831 = vmatpush3.bf16.msra.mxu1 %v2143_v48  ;;  %v2147_v52 = vld [vmem:[%s2901_s28 + $0x20] sm:$0xff]   ;;  %v2148_v53 = vld [vmem:[%s2901_s28 + $0x28] sm:$0xff]   ;;  %vm2499_vm0 = vmmov (%p3080_p8), 0   ;;  %vm1337_vm1 = vcmask (%p3080_p8), 523264   ;;  %vm1382_vm2 = vcmask (%p3080_p8), 1043456   ;;  %s1695_s12 = sshll.u32 (%p3080_p8), %s2578_s17, 7 }
  0x75   : >> { %1832 = vmatprep.subr.bf16.mxu1 %v2144_v49  ;;  %s1494_s18 = sshll.u32 (%p3080_p8), %s2751_s19, 4  ;;  %p3299_p2 = scmp.ne.s32.totalorder (%p3080_p8), %s3263_s30, 0  ;;  %s3194_s18 = int_to_ptr.vmem [resolvable:$true] %s1494_s18 }
  0x76   : >> { %532 = vadd.xlane.f32.xlu0 %v516_v24  ;;  %534 = vadd.xlane.f32.xlu1 %v517_v25  ;;  %s2501_s17 = smov (%p3080_p8), [#allocation8]  }
  0x77   : >> { %1801 = vmatpush3.bf16.msra.mxu0 %v2136_v31 }
  0x78   : >> { %1802 = vmatprep.subr.bf16.mxu0 %v2137_v34  ;;  %1833 = vmatpush3.bf16.msra.mxu1 %v2144_v49 }
  0x79   : >> { %1834 = vmatprep.subr.bf16.mxu1 %v2145_v50 }
  0x7a   : >> { %536 = vadd.xlane.f32.xlu0 %v518_v26  ;;  %538 = vadd.xlane.f32.xlu1 %v519_v27 }
  0x7b   : >> { %1803 = vmatpush3.bf16.msra.mxu0 %v2137_v34 }
  0x7c   : >> { %1804 = vmatprep.subr.bf16.mxu0 %v2138_v35  ;;  %1835 = vmatpush3.bf16.msra.mxu1 %v2145_v50 }
  0x7d   : >> { %1836 = vmatprep.subr.bf16.mxu1 %v2146_v51 }
  0x7e   : >> { %475 = vadd.xlane.f32.xlu0 %v2471_v10  ;;  %477 = vadd.xlane.f32.xlu1 %v2467_v11 }
  0x7f   : >> { %1805 = vmatpush3.bf16.msra.mxu0 %v2138_v35 }
  0x80   : >> { %1806 = vmatprep.subr.bf16.mxu0 %v2139_v36  ;;  %1837 = vmatpush3.bf16.msra.mxu1 %v2146_v51  ;;  %v2939_v51 = vld [vmem:[%s463_s22] ss:$0 sm:$0xff] }
  0x81   : >> { %1838 = vmatprep.subr.bf16.mxu1 %v2147_v52 }
  0x82   : >> { %479 = vadd.xlane.f32.xlu0 %v2463_v12  ;;  %481 = vadd.xlane.f32.xlu1 %v2459_v13 }
  0x83   : >> { %1807 = vmatpush3.bf16.msra.mxu0 %v2139_v36 }
  0x84   : >> { %1808 = vmatprep.subr.bf16.mxu0 %v2140_v39  ;;  %1839 = vmatpush3.bf16.msra.mxu1 %v2147_v52 }
  0x85   : >> { %1840 = vmatprep.subr.bf16.mxu1 %v2148_v53 }
  0x86   : >> { %540 = vadd.xlane.f32.xlu0 %v520_v29  ;;  %542 = vadd.xlane.f32.xlu1 %v521_v30 }
  0x87   : >> { %1809 = vmatpush3.bf16.msra.mxu0 %v2140_v39 }
  0x88   : >> { %1810 = vmatprep.subr.bf16.mxu0 %v2141_v42  ;;  %1841 = vmatpush3.bf16.msra.mxu1 %v2148_v53 }
  0x8a   : >> { %544 = vadd.xlane.f32.xlu0 %v522_v32  ;;  %546 = vadd.xlane.f32.xlu1 %v523_v33 }
  0x8b   : >> { %1811 = vmatpush3.bf16.msra.mxu0 %v2141_v42 }
  0x8c   : >> { %1812 = vmatprep.subr.bf16.mxu0 %v2142_v43 }
  0x8e   : >> { %483 = vadd.xlane.f32.xlu0 %v2455_v16  ;;  %485 = vadd.xlane.f32.xlu1 %v2451_v17 }
  0x8f   : >> { %1813 = vmatpush3.bf16.msra.mxu0 %v2142_v43 }
  0x92   : >> { %487 = vadd.xlane.f32.xlu0 %v2447_v18  ;;  %489 = vadd.xlane.f32.xlu1 %v2443_v19 }
  0x96   : >> { %548 = vadd.xlane.f32.xlu0 %v524_v37  ;;  %550 = vadd.xlane.f32.xlu1 %v525_v38 }
  0x9a   : >> { %552 = vadd.xlane.f32.xlu0 %v526_v40  ;;  %554 = vadd.xlane.f32.xlu1 %v527_v41 }
  0x9e   : >> { %491 = vadd.xlane.f32.xlu0 %v2439_v20  ;;  %493 = vadd.xlane.f32.xlu1 %v2435_v21 }
  0xa2   : >> { %495 = vadd.xlane.f32.xlu0 %v2431_v22  ;;  %497 = vadd.xlane.f32.xlu1 %v2427_v23 }
  0xa6   : >> { %556 = vadd.xlane.f32.xlu0 %v528_v44  ;;  %558 = vadd.xlane.f32.xlu1 %v529_v45 }
  0xaa   : >> { %560 = vadd.xlane.f32.xlu0 %v530_v46  ;;  %562 = vadd.xlane.f32.xlu1 %v531_v47 }
  0xfb   : >> { %v468_v54 = vpop.xlane.xlu0 %467  ;;  %v472_v55 = vpop.xlane.xlu1 %471 }
  0xfc   : >> { %v500_v58 = vmul.f32 0.0078125, %v468_v54  ;;  %v2909_v60 = vmul.f32 0.0078125, %v472_v55 }
  0xfe   : >> { %v580_v0 = vmul.f32 %v500_v58, %v500_v58  ;;  %v582_v14 = vmul.f32 %v2909_v60, %v2909_v60  ;;  %v612_v40 = vsub.f32 %v2487_v3, %v500_v58  ;;  %v614_v54 = vsub.f32 %v2479_v5, %v2909_v60 }
  0xff   : >> { %v470_v56 = vpop.xlane.xlu0 %469  ;;  %v474_v57 = vpop.xlane.xlu1 %473 }
 0x100   : >> { %v501_v59 = vmul.f32 0.0078125, %v470_v56  ;;  %v2911_v61 = vmul.f32 0.0078125, %v474_v57  ;;  %v2943_v57 = vld [vmem:[%s465_s26] ss:$0 sm:$0xff] }
 0x102   : >> { %v581_v1 = vmul.f32 %v501_v59, %v501_v59  ;;  %v583_v15 = vmul.f32 %v2911_v61, %v2911_v61  ;;  %v613_v41 = vsub.f32 %v2483_v4, %v501_v59  ;;  %v615_v59 = vsub.f32 %v2475_v6, %v2911_v61 }
 0x103   : >> { %v533_v62 = vpop.xlane.xlu0 %532  ;;  %v535_v63 = vpop.xlane.xlu1 %534 }
 0x104   : >> { %v564_v2 = vmul.f32 0.0078125, %v533_v62  ;;  %v565_v7 = vmul.f32 0.0078125, %v535_v63 }
 0x106   : >> { %v596_v8 = vsub.f32 %v564_v2, %v580_v0  ;;  %v597_v9 = vsub.f32 %v565_v7, %v581_v1 }
 0x107   : >> { %v537_v24 = vpop.xlane.xlu0 %536  ;;  %v539_v25 = vpop.xlane.xlu1 %538 }
 0x108   : >> { %v628_v26 = vadd.f32 1e-05, %v596_v8  ;;  %v629_v27 = vadd.f32 1e-05, %v597_v9  ;;  %v566_v28 = vmul.f32 0.0078125, %v537_v24  ;;  %v567_v29 = vmul.f32 0.0078125, %v539_v25 }
 0x10a   : >> { %2151 = vrsqrt.f32 %v628_v26  ;;  %v598_v30 = vsub.f32 %v566_v28, %v582_v14  ;;  %v599_v31 = vsub.f32 %v567_v29, %v583_v15 }
 0x10b   : >> { %2153 = vrsqrt.f32 %v629_v27  ;;  %v476_v32 = vpop.xlane.xlu0 %475  ;;  %v478_v33 = vpop.xlane.xlu1 %477 }
 0x10c   : >> { %v630_v34 = vadd.f32 1e-05, %v598_v30  ;;  %v631_v35 = vadd.f32 1e-05, %v599_v31  ;;  %v2917_v38 = vmul.f32 0.0078125, %v476_v32  ;;  %v2919_v39 = vmul.f32 0.0078125, %v478_v33 }
 0x10e   : >> { %2155 = vrsqrt.f32 %v630_v34  ;;  %v584_v47 = vmul.f32 %v2917_v38, %v2917_v38  ;;  %v585_v48 = vmul.f32 %v2919_v39, %v2919_v39 }
 0x10f   : >> { %2157 = vrsqrt.f32 %v631_v35  ;;  %v480_v36 = vpop.xlane.xlu0 %479  ;;  %v482_v37 = vpop.xlane.xlu1 %481 }
 0x110   : >> { %v2927_v42 = vmul.f32 0.0078125, %v480_v36  ;;  %v2929_v43 = vmul.f32 0.0078125, %v482_v37 }
 0x112   : >> { %v586_v62 = vmul.f32 %v2927_v42, %v2927_v42  ;;  %v587_v63 = vmul.f32 %v2929_v43, %v2929_v43 }
 0x113   : >> { %v541_v44 = vpop.xlane.xlu0 %540  ;;  %v543_v45 = vpop.xlane.xlu1 %542 }
 0x114   : >> { %v2152_v46 = vpop.eup %2151  ;;  %v568_v49 = vmul.f32 0.0078125, %v541_v44  ;;  %v569_v50 = vmul.f32 0.0078125, %v543_v45 }
 0x115   : >> { %v2154_v52 = vpop.eup %2153  ;;  %v660_v53 = vmul.f32 %v2152_v46, %v612_v40 }
 0x116   : >> { %v600_v55 = vsub.f32 %v568_v49, %v584_v47  ;;  %v601_v56 = vsub.f32 %v569_v50, %v585_v48  ;;  %v661_v58 = vmul.f32 %v2154_v52, %v613_v41  ;;  %v616_v48 = vsub.f32 %v2471_v10, %v2917_v38 }
 0x117   : >> { %v545_v0 = vpop.xlane.xlu0 %544  ;;  %v547_v1 = vpop.xlane.xlu1 %546  ;;  %v682_v2 = vmul.f32 %v2939_v51, %v660_v53  ;;  %v617_v49 = vsub.f32 %v2467_v11, %v2919_v39  ;;  %v618_v39 = vsub.f32 %v2463_v12, %v2927_v42 }
 0x118   : >> { %v2156_v7 = vpop.eup %2155  ;;  %v632_v60 = vadd.f32 1e-05, %v600_v55  ;;  %v633_v8 = vadd.f32 1e-05, %v601_v56  ;;  %v570_v9 = vmul.f32 0.0078125, %v545_v0  ;;  %v571_v14 = vmul.f32 0.0078125, %v547_v1 }
 0x119   : >> { %v2158_v15 = vpop.eup %2157  ;;  %v683_v24 = vmul.f32 %v2939_v51, %v661_v58  ;;  %v704_v61 = vadd.f32 %v2943_v57, %v682_v2  ;;  %v662_v25 = vmul.f32 %v2156_v7, %v614_v54  ;;  %v619_v7 = vsub.f32 %v2459_v13, %v2929_v43 }
 0x11a   : >> { %2159 = vrsqrt.f32 %v632_v60  ;;  %v602_v26 = vsub.f32 %v570_v9, %v586_v62  ;;  %v603_v27 = vsub.f32 %v571_v14, %v587_v63  ;;  %v663_v28 = vmul.f32 %v2158_v15, %v615_v59 }
 0x11b   : >> { %2161 = vrsqrt.f32 %v633_v8  ;;  %v484_v29 = vpop.xlane.xlu0 %483  ;;  %v486_v30 = vpop.xlane.xlu1 %485  ;;  %v705_v31 = vadd.f32 %v2943_v57, %v683_v24  ;;  %v684_v32 = vmul.f32 %v2939_v51, %v662_v25 }
 0x11c   : >> { %v634_v33 = vadd.f32 1e-05, %v602_v26  ;;  %v635_v34 = vadd.f32 1e-05, %v603_v27  ;;  %v685_v36 = vmul.f32 %v2939_v51, %v663_v28  ;;  %v2959_v45 = vmul.f32 0.0078125, %v484_v29 }
 0x11d   : >> { %v720_v35 = vpack.c.bf16 %v705_v31, %v704_v61  ;;  %v706_v37 = vadd.f32 %v2943_v57, %v684_v32  ;;  %v2961_v46 = vmul.f32 0.0078125, %v486_v30 }
 0x11e   : >> { %2163 = vrsqrt.f32 %v634_v33  ;;  %v707_v44 = vadd.f32 %v2943_v57, %v685_v36  ;;  %v588_v56 = vmul.f32 %v2959_v45, %v2959_v45 }
 0x11f   : >> { %2165 = vrsqrt.f32 %v635_v34  ;;  %1814 = vmatprep.mubr.bf16.mxu0 %v720_v35  ;;  %v488_v40 = vpop.xlane.xlu0 %487  ;;  %v490_v41 = vpop.xlane.xlu1 %489  ;;  %v589_v58 = vmul.f32 %v2961_v46, %v2961_v46 }
 0x120   : >> { %v721_v47 = vpack.c.bf16 %v707_v44, %v706_v37  ;;  %v2967_v50 = vmul.f32 0.0078125, %v488_v40  ;;  %v2969_v52 = vmul.f32 0.0078125, %v490_v41 }
 0x122   : >> { %1815 = vmatmul.mubr.bf16.vlgmr.msra.gmra.mrb[0].mxu0 %v721_v47  ;;  %v590_v60 = vmul.f32 %v2967_v50, %v2967_v50  ;;  %v591_v8 = vmul.f32 %v2969_v52, %v2969_v52 }
 0x123   : >> { %v549_v53 = vpop.xlane.xlu0 %548  ;;  %v551_v54 = vpop.xlane.xlu1 %550 }
 0x124   : >> { %v2160_v55 = vpop.eup %2159  ;;  %v572_v59 = vmul.f32 0.0078125, %v549_v53  ;;  %v573_v62 = vmul.f32 0.0078125, %v551_v54 }
 0x125   : >> { %v2162_v38 = vpop.eup %2161  ;;  %v664_v63 = vmul.f32 %v2160_v55, %v616_v48 }
 0x126   : >> { %v604_v0 = vsub.f32 %v572_v59, %v588_v56  ;;  %v605_v1 = vsub.f32 %v573_v62, %v589_v58  ;;  %v665_v2 = vmul.f32 %v2162_v38, %v617_v49  ;;  %v620_v58 = vsub.f32 %v2455_v16, %v2959_v45 }
 0x127   : >> { %v553_v9 = vpop.xlane.xlu0 %552  ;;  %v555_v14 = vpop.xlane.xlu1 %554  ;;  %v686_v15 = vmul.f32 %v2939_v51, %v664_v63  ;;  %v621_v59 = vsub.f32 %v2451_v17, %v2961_v46  ;;  %v622_v45 = vsub.f32 %v2447_v18, %v2967_v50 }
 0x128   : >> { %v2164_v24 = vpop.eup %2163  ;;  %v636_v61 = vadd.f32 1e-05, %v604_v0  ;;  %v637_v25 = vadd.f32 1e-05, %v605_v1  ;;  %v574_v42 = vmul.f32 0.0078125, %v553_v9  ;;  %v575_v26 = vmul.f32 0.0078125, %v555_v14 }
 0x129   : >> { %v2166_v27 = vpop.eup %2165  ;;  %v687_v28 = vmul.f32 %v2939_v51, %v665_v2  ;;  %v708_v43 = vadd.f32 %v2943_v57, %v686_v15  ;;  %v666_v29 = vmul.f32 %v2164_v24, %v618_v39  ;;  %v623_v24 = vsub.f32 %v2443_v19, %v2969_v52 }
 0x12a   : >> { %2167 = vrsqrt.f32 %v636_v61  ;;  %v606_v30 = vsub.f32 %v574_v42, %v590_v60  ;;  %v607_v31 = vsub.f32 %v575_v26, %v591_v8  ;;  %v667_v32 = vmul.f32 %v2166_v27, %v619_v7 }
 0x12b   : >> { %2169 = vrsqrt.f32 %v637_v25  ;;  %v492_v33 = vpop.xlane.xlu0 %491  ;;  %v494_v34 = vpop.xlane.xlu1 %493  ;;  %v709_v35 = vadd.f32 %v2943_v57, %v687_v28  ;;  %v688_v36 = vmul.f32 %v2939_v51, %v666_v29 }
 0x12c   : >> { %v638_v37 = vadd.f32 1e-05, %v606_v30  ;;  %v639_v40 = vadd.f32 1e-05, %v607_v31  ;;  %v689_v44 = vmul.f32 %v2939_v51, %v667_v32  ;;  %v512_v54 = vmul.f32 0.0078125, %v492_v33 }
 0x12d   : >> { %v722_v41 = vpack.c.bf16 %v709_v35, %v708_v43  ;;  %v710_v47 = vadd.f32 %v2943_v57, %v688_v36  ;;  %v513_v55 = vmul.f32 0.0078125, %v494_v34 }
 0x12e   : >> { %2171 = vrsqrt.f32 %v638_v37  ;;  %v711_v53 = vadd.f32 %v2943_v57, %v689_v44  ;;  %v592_v1 = vmul.f32 %v512_v54, %v512_v54 }
 0x12f   : >> { %2173 = vrsqrt.f32 %v639_v40  ;;  %1818 = vmatprep.mubr.bf16.mxu0 %v722_v41  ;;  %v496_v48 = vpop.xlane.xlu0 %495  ;;  %v498_v49 = vpop.xlane.xlu1 %497  ;;  %v593_v2 = vmul.f32 %v513_v55, %v513_v55 }
 0x130   : >> { %v723_v56 = vpack.c.bf16 %v711_v53, %v710_v47  ;;  %v2995_v62 = vmul.f32 0.0078125, %v496_v48  ;;  %v2997_v38 = vmul.f32 0.0078125, %v498_v49 }
 0x132   : >> { %1819 = vmatmul.mubr.bf16.gmra.mrb[4].mxu0 %v723_v56  ;;  %v594_v61 = vmul.f32 %v2995_v62, %v2995_v62  ;;  %v595_v25 = vmul.f32 %v2997_v38, %v2997_v38 }
 0x133   : >> { %v557_v63 = vpop.xlane.xlu0 %556  ;;  %v559_v39 = vpop.xlane.xlu1 %558 }
 0x134   : >> { %v2168_v0 = vpop.eup %2167  ;;  %v576_v7 = vmul.f32 0.0078125, %v557_v63  ;;  %v577_v60 = vmul.f32 0.0078125, %v559_v39  ;;  %v625_v63 = vsub.f32 %v2435_v21, %v513_v55 }
 0x135   : >> { %v2170_v8 = vpop.eup %2169  ;;  %v668_v9 = vmul.f32 %v2168_v0, %v620_v58  ;;  %v624_v58 = vsub.f32 %v2439_v20, %v512_v54 }
 0x136   : >> { %v608_v14 = vsub.f32 %v576_v7, %v592_v1  ;;  %v609_v15 = vsub.f32 %v577_v60, %v593_v2  ;;  %v669_v46 = vmul.f32 %v2170_v8, %v621_v59  ;;  %v626_v2 = vsub.f32 %v2431_v22, %v2995_v62 }
 0x137   : >> { %v561_v42 = vpop.xlane.xlu0 %560  ;;  %v563_v26 = vpop.xlane.xlu1 %562  ;;  %v690_v27 = vmul.f32 %v2939_v51, %v668_v9  ;;  %v627_v8 = vsub.f32 %v2427_v23, %v2997_v38 }
 0x138   : >> { %v2172_v28 = vpop.eup %2171  ;;  %v640_v43 = vadd.f32 1e-05, %v608_v14  ;;  %v641_v29 = vadd.f32 1e-05, %v609_v15  ;;  %v578_v50 = vmul.f32 0.0078125, %v561_v42  ;;  %v579_v30 = vmul.f32 0.0078125, %v563_v26 }
 0x139   : >> { %v2174_v31 = vpop.eup %2173  ;;  %v691_v32 = vmul.f32 %v2939_v51, %v669_v46  ;;  %v712_v52 = vadd.f32 %v2943_v57, %v690_v27  ;;  %v670_v33 = vmul.f32 %v2172_v28, %v622_v45  ;;  %v2149_v42 = vld [vmem:[%s2901_s28 + $0x30] sm:$0xff]   ;;  %v2150_v26 = vld [vmem:[%s2901_s28 + $0x38] sm:$0xff]   ;;  %v1661_v27 = vld [vmem:[%s747_s29] ss:$0 sm:$0xff]  ;;  %s2500_s29 = smov (%p3080_p8), 1e-24  }
 0x13a   : >> { %2175 = vrsqrt.f32 %v640_v43  ;;  %v610_v34 = vsub.f32 %v578_v50, %v594_v61  ;;  %v611_v35 = vsub.f32 %v579_v30, %v595_v25  ;;  %v671_v36 = vmul.f32 %v2174_v31, %v623_v24  ;;  %1842 = vmatprep.subr.bf16.mxu1 %v2149_v42 }
 0x13b   : >> { %2177 = vrsqrt.f32 %v641_v29  ;;  %v713_v37 = vadd.f32 %v2943_v57, %v691_v32  ;;  %v692_v40 = vmul.f32 %v2939_v51, %v670_v33  ;;  %1843 = vmatpush3.bf16.msra.mxu1 %v2149_v42 }
 0x13c   : >> { %v642_v41 = vadd.f32 1e-05, %v610_v34  ;;  %v643_v44 = vadd.f32 1e-05, %v611_v35  ;;  %v693_v47 = vmul.f32 %v2939_v51, %v671_v36  ;;  %1844 = vmatprep.subr.bf16.mxu1 %v2150_v26 }
 0x13d   : >> { %v724_v48 = vpack.c.bf16 %v713_v37, %v712_v52  ;;  %v714_v49 = vadd.f32 %v2943_v57, %v692_v40 }
 0x13e   : >> { %2179 = vrsqrt.f32 %v642_v41  ;;  %v715_v53 = vadd.f32 %v2943_v57, %v693_v47 }
 0x13f   : >> { %2181 = vrsqrt.f32 %v643_v44  ;;  %1822 = vmatprep.mubr.bf16.mxu0 %v724_v48  ;;  %1845 = vmatpush3.bf16.msra.mxu1 %v2150_v26 }
 0x140   : >> { %v725_v56 = vpack.c.bf16 %v715_v53, %v714_v49 }
 0x142   : >> { %1823 = vmatmul.mubr.bf16.gmra.mrb[8].mxu0 %v725_v56 }
 0x144   : >> { %v2176_v59 = vpop.eup %2175 }
 0x145   : >> { %v2178_v39 = vpop.eup %2177  ;;  %v672_v0 = vmul.f32 %v2176_v59, %v624_v58 }
 0x146   : >> { %v673_v1 = vmul.f32 %v2178_v39, %v625_v63 }
 0x147   : >> { %v694_v7 = vmul.f32 %v2939_v51, %v672_v0 }
 0x148   : >> { %v2180_v60 = vpop.eup %2179  ;;  %v695_v9 = vmul.f32 %v2939_v51, %v673_v1 }
 0x149   : >> { %v2182_v45 = vpop.eup %2181  ;;  %v716_v54 = vadd.f32 %v2943_v57, %v694_v7  ;;  %v674_v55 = vmul.f32 %v2180_v60, %v626_v2 }
 0x14a   : >> { %v717_v14 = vadd.f32 %v2943_v57, %v695_v9  ;;  %v675_v15 = vmul.f32 %v2182_v45, %v627_v8 }
 0x14b   : >> { %v696_v62 = vmul.f32 %v2939_v51, %v674_v55 }
 0x14c   : >> { %v726_v46 = vpack.c.bf16 %v717_v14, %v716_v54  ;;  %v697_v24 = vmul.f32 %v2939_v51, %v675_v15 }
 0x14d   : >> { %v718_v61 = vadd.f32 %v2943_v57, %v696_v62 }
 0x14e   : >> { %1826 = vmatprep.mubr.bf16.mxu0 %v726_v46  ;;  %v719_v38 = vadd.f32 %v2943_v57, %v697_v24 }
 0x150   : >> { %v727_v25 = vpack.c.bf16 %v719_v38, %v718_v61 }
 0x152   : >> { %1827 = vmatmul.mubr.bf16.gmra.mrb[12].mxu0 %v727_v25 }
 0x1f5   : >> { %v1816_v28 = vpop.f32.mrb[0].mxu0 }
 0x1f6   : >> { %v846_v51 = vadd.f32 %v1816_v28, %v1661_v27  ;;  %v837_v43 = vpop.f32.mrb[1].mxu0 }
 0x1f7   : >> { %v838_v29 = vadd.f32 %v1661_v27, %v837_v43  ;;  %v1817_v50 = vpop.f32.mrb[2].mxu0 }
 0x1f8   : >> { %v849_v30 = vadd.f32 %v1817_v50, %v1661_v27  ;;  %v840_v57 = vpop.f32.mrb[3].mxu0  ;;  %v902_v32 = vmax.f32 %v846_v51, 0.0 }
 0x1f9   : >> { %v841_v31 = vadd.f32 %v1661_v27, %v840_v57  ;;  %v900_v33 = vmax.f32 %v838_v29, 0.0 }
 0x1fa   : >> { %v903_v52 = vmax.f32 %v849_v30, 0.0 }
 0x1fb   : >> { %v901_v34 = vmax.f32 %v841_v31, 0.0 }
 0x1fc   : >> { %v917_v35 = vpack.c.bf16 %v903_v52, %v902_v32  ;;  %v1671_v52 = vld [vmem:[%s942_s27] ss:$0 sm:$0xff] }
 0x1fd   : >> { %v916_v36 = vpack.c.bf16 %v901_v34, %v900_v33 }
 0x1ff   : >> { %1846 = vmatprep.mubr.bf16.mxu1 %v916_v36 }
 0x200   : >> { %1847 = vmatmul.mubr.bf16.vlgmr.msra.gmra.mrb[0].mxu1 %v917_v35 }
 0x205   : >> { %v1820_v37 = vpop.f32.mrb[4].mxu0 }
 0x206   : >> { %v862_v40 = vadd.f32 %v1820_v37, %v1661_v27  ;;  %v853_v41 = vpop.f32.mrb[5].mxu0 }
 0x207   : >> { %v854_v44 = vadd.f32 %v1661_v27, %v853_v41  ;;  %v1821_v47 = vpop.f32.mrb[6].mxu0 }
 0x208   : >> { %v865_v48 = vadd.f32 %v1821_v47, %v1661_v27  ;;  %v856_v49 = vpop.f32.mrb[7].mxu0  ;;  %v906_v56 = vmax.f32 %v862_v40, 0.0 }
 0x209   : >> { %v857_v53 = vadd.f32 %v1661_v27, %v856_v49  ;;  %v904_v59 = vmax.f32 %v854_v44, 0.0 }
 0x20a   : >> { %v907_v58 = vmax.f32 %v865_v48, 0.0 }
 0x20b   : >> { %v905_v63 = vmax.f32 %v857_v53, 0.0 }
 0x20c   : >> { %v919_v39 = vpack.c.bf16 %v907_v58, %v906_v56 }
 0x20d   : >> { %v918_v0 = vpack.c.bf16 %v905_v63, %v904_v59 }
 0x20f   : >> { %1850 = vmatprep.mubr.bf16.mxu1 %v918_v0 }
 0x210   : >> { %1851 = vmatmul.mubr.bf16.gmra.mrb[4].mxu1 %v919_v39 }
 0x215   : >> { %v1824_v1 = vpop.f32.mrb[8].mxu0 }
 0x216   : >> { %v878_v2 = vadd.f32 %v1824_v1, %v1661_v27  ;;  %v869_v7 = vpop.f32.mrb[9].mxu0 }
 0x217   : >> { %v870_v60 = vadd.f32 %v1661_v27, %v869_v7  ;;  %v1825_v8 = vpop.f32.mrb[10].mxu0 }
 0x218   : >> { %v881_v9 = vadd.f32 %v1825_v8, %v1661_v27  ;;  %v872_v45 = vpop.f32.mrb[11].mxu0  ;;  %v910_v55 = vmax.f32 %v878_v2, 0.0 }
 0x219   : >> { %v873_v54 = vadd.f32 %v1661_v27, %v872_v45  ;;  %v908_v15 = vmax.f32 %v870_v60, 0.0 }
 0x21a   : >> { %v911_v14 = vmax.f32 %v881_v9, 0.0 }
 0x21b   : >> { %v909_v62 = vmax.f32 %v873_v54, 0.0 }
 0x21c   : >> { %v921_v46 = vpack.c.bf16 %v911_v14, %v910_v55 }
 0x21d   : >> { %v920_v24 = vpack.c.bf16 %v909_v62, %v908_v15 }
 0x21f   : >> { %1854 = vmatprep.mubr.bf16.mxu1 %v920_v24 }
 0x220   : >> { %1855 = vmatmul.mubr.bf16.gmra.mrb[8].mxu1 %v921_v46 }
 0x225   : >> { %v1828_v61 = vpop.f32.mrb[12].mxu0 }
 0x226   : >> { %v894_v38 = vadd.f32 %v1828_v61, %v1661_v27  ;;  %v885_v25 = vpop.f32.mrb[13].mxu0 }
 0x227   : >> { %v886_v42 = vadd.f32 %v1661_v27, %v885_v25  ;;  %v1829_v26 = vpop.f32.mrb[14].mxu0 }
 0x228   : >> { %v897_v28 = vadd.f32 %v1829_v26, %v1661_v27  ;;  %v888_v51 = vpop.f32.mrb[15].mxu0  ;;  %v914_v29 = vmax.f32 %v894_v38, 0.0 }
 0x229   : >> { %v889_v43 = vadd.f32 %v1661_v27, %v888_v51  ;;  %v912_v30 = vmax.f32 %v886_v42, 0.0 }
 0x22a   : >> { %v915_v50 = vmax.f32 %v897_v28, 0.0  ;;  %v2183_v28 = vld [vmem:[%s3245_s7] sm:$0xff] (%p3080_p8)  }
 0x22b   : >> { %v913_v57 = vmax.f32 %v889_v43, 0.0  ;;  %v2184_v43 = vld [vmem:[%s3245_s7 + $0x8] sm:$0xff] (%p3080_p8)   ;;  %1862 = vmatprep.subr.bf16.mxu0 (%p3080_p8), %v2183_v28 }
 0x22c   : >> { %v923_v31 = vpack.c.bf16 %v915_v50, %v914_v29  ;;  %1863 = vmatpush3.bf16.msra.mxu0 (%p3080_p8), %v2183_v28  ;;  %v2185_v29 = vld [vmem:[%s3245_s7 + $0x10] sm:$0xff] (%p3080_p8)  }
 0x22d   : >> { %v922_v32 = vpack.c.bf16 %v913_v57, %v912_v30  ;;  %1864 = vmatprep.subr.bf16.mxu0 (%p3080_p8), %v2184_v43 }
 0x22f   : >> { %1858 = vmatprep.mubr.bf16.mxu1 %v922_v32 }
 0x230   : >> { %1859 = vmatmul.mubr.bf16.gmra.mrb[12].mxu1 %v923_v31  ;;  %1865 = vmatpush3.bf16.msra.mxu0 (%p3080_p8), %v2184_v43 }
 0x231   : > { %1866 = vmatprep.subr.bf16.mxu0 (%p3080_p8), %v2185_v29 }
 0x234   : > { %1867 = vmatpush3.bf16.msra.mxu0 (%p3080_p8), %v2185_v29 }
 0x2d3   : >> { %v1848_v33 = vpop.f32.mrb[0].mxu1 }
 0x2d4   : >> { %v1041_v34 = vadd.f32 %v1848_v33, %v1671_v52  ;;  %v1032_v35 = vpop.f32.mrb[1].mxu1  ;;  %v2191_v33 = vld [vmem:[%s3246_s8] sm:$0xff] (%p3080_p8)  }
 0x2d5   : >> { %v1033_v36 = vadd.f32 %v1671_v52, %v1032_v35  ;;  %v1849_v37 = vpop.f32.mrb[2].mxu1  ;;  %v2192_v35 = vld [vmem:[%s3246_s8 + $0x8] sm:$0xff] (%p3080_p8)  }
 0x2d6   : >> { %v3040_v5 = vadd.f32 %v2479_v5, %v1041_v34   ;;  %v1044_v40 = vadd.f32 %v1849_v37, %v1671_v52  ;;  %v1035_v41 = vpop.f32.mrb[3].mxu1  ;;  %v2498_v34 = vmov (%p3080_p8), 0.0   ;;  %v2194_v37 = vld [vmem:[%s3246_s8 + $0x18] sm:$0xff] (%p3080_p8)  }
 0x2d7   : >> { %v3043_v3 = vadd.f32 %v2487_v3, %v1033_v36   ;;  %v1036_v47 = vadd.f32 %v1671_v52, %v1035_v41  ;;  %1894 = vmatprep.subr.bf16.mxu1 (%p3080_p8), %v2498_v34  ;;  %1902 = vmatprep.mubr.msk.bf16.mxu1 (%p3080_p8), %vm2499_vm0, %v2498_v34  ;;  %v2193_v36 = vld [vmem:[%s3246_s8 + $0x10] sm:$0xff] (%p3080_p8)  }
 0x2d8   : >> { %v3270_v27 = vmov %v3040_v5  ;;  %v3046_v6 = vadd.f32 %v2475_v6, %v1044_v40   ;;  %1895 = vmatpush3.bf16.msra.mxu1 (%p3080_p8), %v2191_v33 }
 0x2d9   : >> { %v3271_v44 = vmov %v3043_v3  ;;  %v1096_v49 = vadd.f32 %v2483_v4, %v1036_v47   ;;  %1896 = vmatprep.subr.bf16.mxu1 (%p3080_p8), %v2498_v34 }
 0x2da   : >> { %v3272_v48 = vmov %v3046_v6 }
 0x2db   : > { %v1111_v51 = vpack.c.bf16 (%p3080_p8), %v1096_v49, %v3271_v44 }
 0x2dc   : > { %1897 = vmatpush3.bf16.msra.mxu1 (%p3080_p8), %v2192_v35 }
 0x2dd   : > { %1878 = vmatprep.mubr.bf16.mxu0 (%p3080_p8), %v1111_v51  ;;  %1898 = vmatprep.subr.bf16.mxu1 (%p3080_p8), %v2498_v34 }
 0x2e0   : > { %1899 = vmatpush3.bf16.msra.mxu1 (%p3080_p8), %v2193_v36 }
 0x2e1   : > { %1900 = vmatprep.subr.bf16.mxu1 (%p3080_p8), %v2498_v34 }
 0x2e3   : >> { %v1852_v53 = vpop.f32.mrb[4].mxu1 }
 0x2e4   : >> { %v1057_v56 = vadd.f32 %v1852_v53, %v1671_v52  ;;  %v1048_v58 = vpop.f32.mrb[5].mxu1  ;;  %1901 = vmatpush3.bf16.msra.mxu1 (%p3080_p8), %v2194_v37 }
 0x2e5   : >> { %v1049_v59 = vadd.f32 %v1671_v52, %v1048_v58  ;;  %v1853_v63 = vpop.f32.mrb[6].mxu1  ;;  %1906 = vmatprep.subr.bf16.mxu1 (%p3080_p8), %v2498_v34 }
 0x2e6   : >> { %v3050_v12 = vadd.f32 %v2463_v12, %v1057_v56   ;;  %v1060_v5 = vadd.f32 %v1853_v63, %v1671_v52  ;;  %v1051_v0 = vpop.f32.mrb[7].mxu1 }
 0x2e7   : >> { %v3053_v10 = vadd.f32 %v2471_v10, %v1049_v59   ;;  %v1052_v3 = vadd.f32 %v1671_v52, %v1051_v0 }
 0x2e8   : >> { %v3273_v39 = vmov %v3050_v12  ;;  %v3056_v13 = vadd.f32 %v2459_v13, %v1060_v5   ;;  %v3296_v5 = vmov %v3270_v27 }
 0x2e9   : >> { %v3274_v1 = vmov %v3053_v10  ;;  %v3059_v11 = vadd.f32 %v2467_v11, %v1052_v3   ;;  %v3298_v3 = vmov %v3271_v44 }
 0x2ea   : >> { %v3275_v2 = vmov %v3056_v13 }
 0x2eb   : >> { %v3276_v7 = vmov %v3059_v11  ;;  %v1114_v30 = vpack.c.bf16 (%p3080_p8), %v3275_v2, %v3273_v39 }
 0x2ec   : > { %v1113_v50 = vpack.c.bf16 (%p3080_p8), %v3276_v7, %v3274_v1 }
 0x2f3   : >> { %v1856_v4 = vpop.f32.mrb[8].mxu1 }
 0x2f4   : >> { %v1073_v6 = vadd.f32 %v1856_v4, %v1671_v52  ;;  %v1064_v60 = vpop.f32.mrb[9].mxu1  ;;  %v3297_v4 = vmov %v1096_v49 }
 0x2f5   : >> { %v1065_v8 = vadd.f32 %v1671_v52, %v1064_v60  ;;  %v1857_v9 = vpop.f32.mrb[10].mxu1 }
 0x2f6   : >> { %v3062_v18 = vadd.f32 %v2447_v18, %v1073_v6   ;;  %v1076_v12 = vadd.f32 %v1857_v9, %v1671_v52  ;;  %v1067_v54 = vpop.f32.mrb[11].mxu1  ;;  %v3295_v6 = vmov %v3272_v48 }
 0x2f7   : >> { %v3065_v16 = vadd.f32 %v2455_v16, %v1065_v8   ;;  %v1068_v10 = vadd.f32 %v1671_v52, %v1067_v54  ;;  %v1296_v54 = vld [vmem:[%s3247_s9] sm:$0xf] (%p3080_p8) }
 0x2f8   : >> { %v3277_v45 = vmov %v3062_v18  ;;  %v3068_v19 = vadd.f32 %v2443_v19, %v1076_v12   ;;  %v3292_v12 = vmov %v3273_v39 }
 0x2f9   : >> { %v3278_v55 = vmov %v3065_v16  ;;  %v3071_v17 = vadd.f32 %v2451_v17, %v1068_v10   ;;  %v3294_v10 = vmov %v3274_v1 }
 0x2fa   : >> { %v3279_v14 = vmov %v3068_v19 }
 0x2fb   : >> { %v3280_v15 = vmov %v3071_v17  ;;  %v3287_v19 = vmov %v3279_v14  ;;  %v1116_v31 = vpack.c.bf16 (%p3080_p8), %v3279_v14, %v3277_v45 }
 0x2fc   : >> { %v3289_v17 = vmov %v3280_v15  ;;  %v2187_v19 = vld [vmem:[%s3245_s7 + $0x20] sm:$0xff] (%p3080_p8)   ;;  %v1115_v57 = vpack.c.bf16 (%p3080_p8), %v3280_v15, %v3278_v55 }
 0x2fd   : > { %v2186_v17 = vld [vmem:[%s3245_s7 + $0x18] sm:$0xff] (%p3080_p8)  }
 0x2fe   : > { %1868 = vmatprep.subr.bf16.mxu0 (%p3080_p8), %v2186_v17 }
 0x2ff   : > { %1869 = vmatpush3.bf16.msra.mxu0 (%p3080_p8), %v2186_v17 }
 0x300   : > { %1870 = vmatprep.subr.bf16.mxu0 (%p3080_p8), %v2187_v19 }
 0x303   : >> { %v1860_v11 = vpop.f32.mrb[12].mxu1  ;;  %1871 = vmatpush3.bf16.msra.mxu0 (%p3080_p8), %v2187_v19 }
 0x304   : >> { %v1089_v13 = vadd.f32 %v1860_v11, %v1671_v52  ;;  %v1080_v62 = vpop.f32.mrb[13].mxu1  ;;  %v3293_v11 = vmov %v3276_v7 }
 0x305   : >> { %v1081_v46 = vadd.f32 %v1671_v52, %v1080_v62  ;;  %v1861_v24 = vpop.f32.mrb[14].mxu1  ;;  %445 = sbr.rel (!%p3080_p8) target bundleno = 110 (0x6e), region = 126 }
 0x306   : >> { %v3074_v22 = vadd.f32 %v2431_v22, %v1089_v13   ;;  %v1092_v18 = vadd.f32 %v1861_v24, %v1671_v52  ;;  %v1083_v38 = vpop.f32.mrb[15].mxu1  ;;  %v3291_v13 = vmov %v3275_v2 }
 0x307   : >> { %v1107_v25 = vadd.f32 %v2439_v20, %v1081_v46   ;;  %v1084_v16 = vadd.f32 %v1671_v52, %v1083_v38 }
 0x308   : >> { %v3281_v61 = vmov %v3074_v22  ;;  %v1110_v42 = vadd.f32 %v2427_v23, %v1092_v18   ;;  %v3288_v18 = vmov %v3277_v45 }
 0x309   : >> { %v1108_v26 = vadd.f32 %v2435_v21, %v1084_v16   ;;  %v3284_v22 = vmov %v3281_v61  ;;  %v3286_v20 = vmov %v1107_v25  ;;  %v3290_v16 = vmov %v3278_v55 }
 0x30a   : >> { %v3283_v23 = vmov %v1110_v42  ;;  %v2188_v20 = vld [vmem:[%s3245_s7 + $0x28] sm:$0xff] (%p3080_p8)   ;;  %v2190_v22 = vld [vmem:[%s3245_s7 + $0x38] sm:$0xff] (%p3080_p8)   ;;  %v1118_v52 = vpack.c.bf16 (%p3080_p8), %v1110_v42, %v3281_v61 }
 0x30b   : >> { %v3285_v21 = vmov %v1108_v26  ;;  %1872 = vmatprep.subr.bf16.mxu0 (%p3080_p8), %v2188_v20  ;;  %v1112_v23 = vpack.c.bf16 (%p3080_p8), %v3272_v48, %v3270_v27  ;;  %v1117_v32 = vpack.c.bf16 (%p3080_p8), %v1108_v26, %v1107_v25 }
 0x30c   : > { %v2189_v21 = vld [vmem:[%s3245_s7 + $0x30] sm:$0xff]   ;;  %1873 = vmatpush3.bf16.msra.mxu0 %v2188_v20 }
 0x30d   : > { %1874 = vmatprep.subr.bf16.mxu0 %v2189_v21 }
 0x310   : > { %1875 = vmatpush3.bf16.msra.mxu0 %v2189_v21 }
 0x311   : > { %1876 = vmatprep.subr.bf16.mxu0 %v2190_v22 }
 0x314   : > { %1877 = vmatpush3.bf16.msra.mxu0 %v2190_v22 }
 0x317   : > { %1879 = vmatmul.mubr.bf16.vlgmr.msra.gmra.mrb[0].mxu0 %v1112_v23 }
 0x318   : > { %1882 = vmatprep.mubr.bf16.mxu0 %v1113_v50 }
 0x31f   : > { %1883 = vmatmul.mubr.bf16.gmra.mrb[4].mxu0 %v1114_v30 }
 0x320   : > { %1886 = vmatprep.mubr.bf16.mxu0 %v1115_v57 }
 0x327   : > { %1887 = vmatmul.mubr.bf16.gmra.mrb[8].mxu0 %v1116_v31 }
 0x328   : > { %1890 = vmatprep.mubr.bf16.mxu0 %v1117_v32 }
 0x32f   : > { %1891 = vmatmul.mubr.bf16.gmra.mrb[12].mxu0 %v1118_v52 }
 0x3ea   : > { %v1880_v27 = vpop.f32.mrb[0].mxu0 }
 0x3eb   : > { %v1217_v40 = vpop.f32.mrb[1].mxu0 }
 0x3ec   : > { %v1881_v41 = vpop.f32.mrb[2].mxu0 }
 0x3ed   : > { %v1281_v44 = vpack.c.bf16 %v1881_v41, %v1880_v27  ;;  %v1220_v47 = vpop.f32.mrb[3].mxu0 }
 0x3ee   : > { %v1280_v48 = vpack.c.bf16 %v1220_v47, %v1217_v40 }
 0x3f0   : > { %1297 = vxpose.xlu0.c.b16.start [1/4] (short) (narrow) %v1280_v48, 16 }
 0x3f2   : > { %v1884_v49 = vpop.f32.mrb[4].mxu0 }
 0x3f3   : > { %v1233_v53 = vpop.f32.mrb[5].mxu0 }
 0x3f4   : > { %1298 = vxpose.xlu0.c.b16.cont [2/4] (short) (narrow) %v1281_v44, 16  ;;  %v1885_v56 = vpop.f32.mrb[6].mxu0 }
 0x3f5   : > { %v1283_v58 = vpack.c.bf16 %v1885_v56, %v1884_v49  ;;  %v1236_v59 = vpop.f32.mrb[7].mxu0 }
 0x3f6   : > { %v1282_v63 = vpack.c.bf16 %v1236_v59, %v1233_v53 }
 0x3f8   : > { %1299 = vxpose.xlu0.c.b16.cont [3/4] (short) (narrow) %v1282_v63, 16 }
 0x3fa   : > { %v1888_v39 = vpop.f32.mrb[8].mxu0 }
 0x3fb   : > { %v1249_v5 = vpop.f32.mrb[9].mxu0 }
 0x3fc   : > { %1300 = vxpose.xlu0.c.b16.end [4/4] (short) (narrow) %v1283_v58, 16  ;;  %v1889_v0 = vpop.f32.mrb[10].mxu0 }
 0x3fd   : > { %v1285_v1 = vpack.c.bf16 %v1889_v0, %v1888_v39  ;;  %v1252_v3 = vpop.f32.mrb[11].mxu0 }
 0x3fe   : > { %v1284_v2 = vpack.c.bf16 %v1252_v3, %v1249_v5 }
 0x400   : > { %1399 = vxpose.xlu1.c.b16.start [1/4] (short) (narrow) %v1284_v2, 16 }
 0x402   : > { %v1892_v7 = vpop.f32.mrb[12].mxu0 }
 0x403   : > { %v1265_v4 = vpop.f32.mrb[13].mxu0 }
 0x404   : > { %1400 = vxpose.xlu1.c.b16.cont [2/4] (short) (narrow) %v1285_v1, 16  ;;  %v1893_v6 = vpop.f32.mrb[14].mxu0 }
 0x405   : > { %v1287_v60 = vpack.c.bf16 %v1893_v6, %v1892_v7  ;;  %v1268_v8 = vpop.f32.mrb[15].mxu0 }
 0x406   : > { %v1286_v9 = vpack.c.bf16 %v1268_v8, %v1265_v4 }
 0x408   : > { %1401 = vxpose.xlu1.c.b16.cont [3/4] (short) (narrow) %v1286_v9, 16 }
 0x40c   : > { %1402 = vxpose.xlu1.c.b16.end [4/4] (short) (narrow) %v1287_v60, 16 }
 0x456   : > { %v1305_v45 = vpop.trf.xlu0 }
 0x457   : > { %1903 = vmatmul.mubr.msk.bf16.vlgmr.msra.gmra.mrb[0].mxu1 %vm1337_vm1, %v1305_v45 }
 0x458   : > { %1907 = vmatpush3.bf16.msra.mxu1 %v2191_v33  ;;  %1914 = vmatprep.mubr.msk.bf16.mxu1 %vm2499_vm0, %v2498_v34 }
 0x459   : > { %1908 = vmatprep.subr.bf16.mxu1 %v2498_v34 }
 0x45c   : > { %1909 = vmatpush3.bf16.msra.mxu1 %v2192_v35 }
 0x45d   : > { %1910 = vmatprep.subr.bf16.mxu1 %v2498_v34 }
 0x460   : > { %1911 = vmatpush3.bf16.msra.mxu1 %v2193_v36 }
 0x461   : > { %1912 = vmatprep.subr.bf16.mxu1 %v2498_v34 }
 0x464   : > { %1913 = vmatpush3.bf16.msra.mxu1 %v2194_v37 }
 0x466   : > { %v1407_v12 = vpop.trf.xlu1 }
 0x467   : > { %1915 = vmatmul.mubr.msk.bf16.vlgmr.msra.gmra.mrb[4].mxu1 %vm1337_vm1, %v1407_v12 }
 0x52a   : > { %v1375_v55 = vpop.f32.mrb[0].mxu1 }
 0x52b   : > { %v1376_v10 = vadd.f32 %v1375_v55, %v1296_v54  ;;  %v1904_v14 = vpop.f32.mrb[1].mxu1 }
 0x52c   : > { %v1378_v15 = vpop.f32.mrb[2].mxu1 }
 0x52d   : > { %v1905_v11 = vpop.f32.mrb[3].mxu1  ;;  %v1381_v13 = vmul.f32 %v1376_v10, %v1376_v10 }
 0x52f   : > { %v1383_v62 = vsel %vm1382_vm2, %v1381_v13, 0.0 }
 0x530   : > { %1384 = vadd.xlane.f32.xlu0 %v1383_v62 }
 0x53a   : > { %v1452_v46 = vpop.f32.mrb[4].mxu1 }
 0x53b   : > { %v1453_v24 = vadd.f32 %v1452_v46, %v1296_v54  ;;  %v1916_v61 = vpop.f32.mrb[5].mxu1 }
 0x53c   : > { %v1455_v18 = vpop.f32.mrb[6].mxu1 }
 0x53d   : > { %v1458_v38 = vmul.f32 %v1453_v24, %v1453_v24  ;;  %v1917_v25 = vpop.f32.mrb[7].mxu1 }
 0x53f   : > { %v1459_v16 = vsel %vm1382_vm2, %v1458_v38, 0.0 }
 0x540   : > { %1460 = vadd.xlane.f32.xlu1 %v1459_v16 }
 0x5bd   : > { %v1385_v42 = vpop.xlane.xlu0 %1384 }
 0x5be   : > { %v1386_v26 = vrot.slane %v1385_v42, 4 }
 0x5c0   : > { %v1387_v28 = vadd.f32 %v1386_v26, %v1385_v42 }
 0x5c2   : > { %v1388_v51 = vrot.slane %v1387_v28, 2 }
 0x5c4   : > { %v1389_v43 = vadd.f32 %v1388_v51, %v1387_v28 }
 0x5c6   : > { %v1390_v29 = vrot.slane %v1389_v43, 1 }
 0x5c8   : > { %v1391_v17 = vadd.f32 %v1390_v29, %v1389_v43 }
 0x5ca   : > { %1918 = vpush %v1391_v17 }
 0x5cd   : > { %v1461_v19 = vpop.xlane.xlu1 %1460 }
 0x5ce   : > { %v1462_v20 = vrot.slane %v1461_v19, 4 }
 0x5d0   : > { %v1463_v21 = vadd.f32 %v1462_v20, %v1461_v19 }
 0x5d2   : > { %v1464_v22 = vrot.slane %v1463_v21, 2 }
 0x5d4   : > { %v1465_v50 = vadd.f32 %v1464_v22, %v1463_v21 }
 0x5d6   : > { %v1466_v30 = vrot.slane %v1465_v50, 1 }
 0x5d8   : > { %v1467_v31 = vadd.f32 %v1466_v30, %v1465_v50 }
 0x5fb   : > { %s1919_s13 = spop %1918 }
 0x5fc   : > { %s1393_s25 = smax.f32 %s2500_s29, %s1919_s13  ;;  %s3192_s13 = scalar_lea.hbm %s3248_s10, %s1695_s12 }
 0x5fd   : > { %v1394_v23 = vstv %s1393_s25  ;;  %s2285_s25 = scalar_lea.vmem %s3194_s18, 128 }
 0x5fe   : > { %2195 = vrsqrt.f32 %v1394_v23  ;;  %p2286_p0 = scmp.ne.s32.totalorder %s3194_s18, %s2285_s25 }
 0x600   : > { %p2287_p3 = pnand %p2286_p0, %p3299_p2 }
 0x602   : > { %p2288_p7 = pneg %p2287_p3 }
 0x608   : > { %v2196_v57 = vpop.eup %2195 }
 0x609   : > { %1920 = vpush %v2196_v57 }
 0x60a   : > { %1922 = vpush %v1467_v31 }
 0x63a   : > { %s1921_s28 = spop %1920 }
 0x63b   : > { %s1923_s23 = spop %1922  ;;  %v1397_v33 = vstv %s1921_s28  ;;  %s2289_s28 = sshll.u32 %s2501_s17, 4  ;;  %s2290_s28 = int_to_ptr.vmem [resolvable:$false] %s2289_s28 }
 0x63c   : > { %s1469_s27 = smax.f32 %s2500_s29, %s1923_s23  ;;  %v1398_v36 = vmul.f32 %v1397_v33, %v1376_v10  ;;  %s1481_s29 = scalar_lea.sflag [#allocation4], %s2738_s20 }
 0x63d   : > { %v1470_v32 = vstv %s1469_s27  ;;  %s2291_s23 = scalar_lea.vmem %s2290_s28, 256  ;;  %p2292_p9 = scmp.lt.s32.totalorder %s3194_s18, %s2290_s28 }
 0x63e   : > { %2197 = vrsqrt.f32 %v1470_v32  ;;  %p2293_p12 = scmp.lt.s32.totalorder %s2291_s23, %s2285_s25 }
 0x640   : > { %p2294_p1 = por %p2293_p12, %p2292_p9 }
 0x642   : > { %p2295_p13 = pnand %p2294_p1, %p2288_p7 }
 0x648   : > { %v2198_v52 = vpop.eup %2197 }
 0x649   : > { %1924 = vpush %v2198_v52 }
 0x67a   : > { %s1925_s22 = spop %1924 }
 0x67b   : > { %v1473_v34 = vstv %s1925_s22 }
 0x67c   : > { %v1474_v35 = vmul.f32 %v1473_v34, %v1453_v24 }
 0x67e   : > { %v1476_v37 = vrot.slane %v1474_v35, 4 }
 0x680   : > { %v1478_v27 = vsel %vm1382_vm2, %v1398_v36, %v1476_v37 }
 0x681   : > { %1479 = vst [vmem:[%s2751_s19] sm:$0xff] %v1478_v27 }
 0x682   : > { %2298 = shalt.err (!%p2295_p13)
}
 0x683   : > { %s2299_s20 = scalar_lea.hbm %s3192_s13, 128  ;;  %s2303_s22 = scalar_lea.hbm %s3248_s10, 256 }
 0x684   : > { %p2300_p6 = scmp.ne.s32.totalorder %s3192_s13, %s2299_s20  ;;  %p2304_p5 = scmp.lt.u32.totalorder %s3192_s13, %s3248_s10 }
 0x685   : > { %p2305_p11 = scmp.lt.u32.totalorder %s2303_s22, %s2299_s20  ;;  %p2307_p0 = scmp.lt.u32.totalorder %s2299_s20, %s3192_s13 }
 0x686   : > { %p2301_p10 = pnand %p2300_p6, %p3299_p2 }
 0x687   : > { %p2306_p8 = por %p2305_p11, %p2304_p5 }
 0x688   : > { %p2302_p4 = pneg %p2301_p10 }
 0x689   : > { %p2308_p3 = por %p2307_p0, %p2306_p8 }
 0x68b   : > { %p2309_p7 = pnand %p2308_p3, %p2302_p4 }
 0x68d   : > { %2312 = shalt.err (!%p2309_p7)
}
 0x68e   : > { %1936 = dma.vmem_to_hbm [thread:$0]  (%p3299_p2), %s3194_s18, 128, %s3192_s13, %s1481_s29  }
 0x68f PF: > { %s3300_s21 = sld [smem:[#allocation12_spill]]  ;;  %s3301_s25 = sld [smem:[#allocation13_spill]] }
 0x690   : > { %p3303_p12 = scmp.ge.s32.totalorder %s2423_s16, 2 }
 0x695   : > { %s1506_s17 = sand.u32 1, %s3300_s21   ;;  %p3302_p9 = scmp.ne.s32.totalorder %s3301_s25, 0 }
 0x696   : > { %s1507_s28 = scalar_lea.sflag [#allocation4], %s1506_s17 }
 0x697   : > { %p1950_p1 = pnand %p3303_p12, %p3302_p9 }
 0x699   : > { %2406 = dma.done.wait (!%p1950_p1), %s1507_s28, 128  }
 0x69a   : > { %2408 = vsyncadd (!%p1950_p1), %s1507_s28, 4294967168  ;;  %p24_p13 = scmp.ge.s32.totalorder %s2673_s24, 4   ;;  %s3304_s13 = smov %s2415_s14 }
 0x69b   : > { %s3305_s14 = smov %s2419_s15  ;;  %s3306_s15 = smov %s2689_s11 }
 0x69c   : > { %s3307_s16 = smov %s2673_s24  ;;  %26 = sbr.rel (!%p24_p13) target bundleno = 6 (0x6), region = 137 }
 0x6a3   :  { %1512 = vsyncpa [#allocation3], 1 }
 0x6a4   :  { %1514 = vsyncpa [#allocation3 + $0x1], 1 }
 0x6a5   :  { %1515 = vsyncpa [#allocation6], 1 }
 0x6a6   :  { %1516 = vsyncpa [#allocation4], 1 }
 0x6a7   :  { %1518 = vsyncpa [#allocation4 + $0x1], 1 }

</bundles_post_ra>
